<compile_context>
chip_gen: v6e
topology: v6e:2x2x1
jax: 0.10.0
libtpu: 0.0.40
codegen_flags: <defaults>
</compile_context>

<pallas_src>
import math

import numpy as np

import jax
import jax.numpy as jnp
from jax.experimental import pallas as pl
from jax.experimental.pallas import tpu as pltpu


def _level_params(num_levels, h, w):
    """Static pooling geometry per pyramid level (mirrors the PyTorch code)."""
    params = []
    for i in range(num_levels):
        level = i + 1
        kh = math.ceil(h / level)
        kw = math.ceil(w / level)
        sh, sw = kh, kw                       # stride == kernel_size
        ph = (kh * level - h + 1) // 2        # floor of a positive value
        pw = (kw * level - w + 1) // 2
        oh = (h + 2 * ph - kh) // sh + 1
        ow = (w + 2 * pw - kw) // sw + 1
        # Guard against degenerate windows lying entirely in padding (would make
        # a max over an empty slice ill-defined).
        for oy in range(oh):
            y0 = oy * sh - ph
            if min(y0 + kh, h) <= max(y0, 0):
                raise ValueError("SPP level produces an empty pooling window; "
                                 "need h >= num_levels")
        for ox in range(ow):
            x0 = ox * sw - pw
            if min(x0 + kw, w) <= max(x0, 0):
                raise ValueError("SPP level produces an empty pooling window; "
                                 "need w >= num_levels")
        params.append((kh, kw, sh, sw, ph, pw, oh, ow))
    return params


def _row_offsets(params):
    offs, off = [], 0
    for (kh, kw, sh, sw, ph, pw, oh, ow) in params:
        offs.append(off)
        off += oh * ow
    return offs, off


def _avg_pool_matrix(params, h, w):
    """Static (total_windows, H*W) matrix: avg_pool == pool_mat @ x2d.

    Entries are 1/(kh*kw) on valid pixels of each window, 0 elsewhere; this
    reproduces F.avg_pool2d with zero padding and count_include_pad=True.
    """
    _, total = _row_offsets(params)
    mat = np.zeros((total, h * w), dtype=np.float32)
    row = 0
    for (kh, kw, sh, sw, ph, pw, oh, ow) in params:
        inv = 1.0 / float(kh * kw)
        for oy in range(oh):
            for ox in range(ow):
                y0 = oy * sh - ph
                x0 = ox * sw - pw
                for y in range(max(y0, 0), min(y0 + kh, h)):
                    for xx in range(max(x0, 0), min(x0 + kw, w)):
                        mat[row, y * w + xx] = inv
                row += 1
    return mat


def _make_max_kernel(params, h, w, bn):
    offsets, _ = _row_offsets(params)

    def kernel(x_ref, o_ref):
        # x_ref: (bn, h, w, c_tile) channels-last block in VMEM
        # o_ref: (bn, total_windows, c_tile) lane-dense output slab
        for b in range(bn):
            for lvl, (kh, kw, sh, sw, ph, pw, oh, ow) in enumerate(params):
                base = offsets[lvl]
                for oy in range(oh):
                    for ox in range(ow):
                        y0 = oy * sh - ph
                        x0 = ox * sw - pw
                        ys, y1 = max(y0, 0), min(y0 + kh, h)
                        xs, x1 = max(x0, 0), min(x0 + kw, w)
                        # Static-offset slice directly off the ref view; the
                        # -inf padding of max_pool2d == clipping the window.
                        win = x_ref[b, ys:y1, xs:x1, :]         # (wh, ww, C)
                        v = jnp.max(win, axis=0)                # across H: VPU
                        v = jnp.max(v, axis=0, keepdims=True)   # across W -> (1, C)
                        row = base + oy * ow + ox
                        # Direct, lane-dense (unmasked along lanes) row store.
                        o_ref[b, row:row + 1, :] = v.astype(o_ref.dtype)

    return kernel


def _make_avg_kernel(bn):
    def kernel(pm_ref, x_ref, o_ref):
        # pm_ref: (total_windows, h*w) static pooling weights (f32)
        # x_ref : (bn, h*w, c_tile) channels-last, spatially flattened
        # o_ref : (bn, total_windows, c_tile)
        pm = pm_ref[...]
        for b in range(bn):
            xb = x_ref[b].astype(jnp.float32)   # explicit f32 accumulation
            acc = jnp.dot(pm, xb, preferred_element_type=jnp.float32)  # MXU
            o_ref[b, :, :] = acc.astype(o_ref.dtype)

    return kernel


def spp_layer(x, num_levels, pool_type="max_pool"):
    n, c, h, w = x.shape
    params = _level_params(num_levels, h, w)
    _, total_windows = _row_offsets(params)
    itemsize = jnp.dtype(x.dtype).itemsize

    # Channel tiling: keep C dense on the lane axis; split only at 128-lane
    # multiples so both v7x TensorCores get independent grid points and the
    # per-block VMEM footprint stays bounded on the 64 MiB chips.
    c_tile = 128 if (c % 128 == 0 and c >= 256) else c

    # Batch blocking: target roughly <=2 MiB input tiles, cap unroll at 8, and
    # require bn | n so no grid block runs out of bounds.
    per_image = h * w * c_tile * itemsize
    bn_cap = int(max(1, min(n, 8, (2 << 20) // max(1, per_image))))
    bn = next((d for d in range(bn_cap, 0, -1) if n % d == 0), 1)

    grid = (n // bn, c // c_tile)

    compiler_kwargs = dict(dimension_semantics=("parallel", "parallel"))
    est_vmem = (2 * bn * per_image                              # double-buffered input
                + 2 * bn * total_windows * c_tile * itemsize    # output
                + 2 * total_windows * h * w * 4                 # avg pooling matrix
                + (2 << 20))                                    # slack
    if est_vmem > (12 << 20):   # stay clear of the 16 MiB v5e scoped default
        compiler_kwargs["vmem_limit_bytes"] = int(min(2 * est_vmem, 48 << 20))
    cp = pltpu.CompilerParams(**compiler_kwargs)

    x_nhwc = jnp.transpose(x, (0, 2, 3, 1))   # channels-last: C on the lane axis
    out_shape = jax.ShapeDtypeStruct((n, total_windows, c), x.dtype)

    if pool_type == "max_pool":
        kernel = _make_max_kernel(params, h, w, bn)
        out = pl.pallas_call(
            kernel,
            out_shape=out_shape,
            grid=grid,
            in_specs=[pl.BlockSpec((bn, h, w, c_tile),
                                   lambda b, ci: (b, 0, 0, ci))],
            out_specs=pl.BlockSpec((bn, total_windows, c_tile),
                                   lambda b, ci: (b, 0, ci)),
            compiler_params=cp,
        )(x_nhwc)
    else:
        pool_mat = jnp.asarray(_avg_pool_matrix(params, h, w))
        x_flat = x_nhwc.reshape(n, h * w, c)
        kernel = _make_avg_kernel(bn)
        out = pl.pallas_call(
            kernel,
            out_shape=out_shape,
            grid=grid,
            in_specs=[pl.BlockSpec((total_windows, h * w),
                                   lambda b, ci: (0, 0)),
                      pl.BlockSpec((bn, h * w, c_tile),
                                   lambda b, ci: (b, 0, ci))],
            out_specs=pl.BlockSpec((bn, total_windows, c_tile),
                                   lambda b, ci: (b, 0, ci)),
            compiler_params=cp,
        )(pool_mat, x_flat)

    # Glue: recover torch ordering. Per level, (n, oh*ow, C) -> (n, C, oh*ow)
    # -> (n, C*oh*ow); concat over levels == torch `.view(num,-1)` + cat.
    flats, off = [], 0
    for (kh, kw, sh, sw, ph, pw, oh, ow) in params:
        sz = oh * ow
        chunk = out[:, off:off + sz, :]
        flats.append(jnp.transpose(chunk, (0, 2, 1)).reshape(n, -1))
        off += sz
    return jnp.concatenate(flats, axis=1)


def spp_ref_numpy(x, num_levels, pool_type="max_pool"):
    """Pure-numpy reference mirroring torch F.max_pool2d/avg_pool2d semantics."""
    x = np.asarray(x)
    n, c, h, w = x.shape
    outs = []
    for (kh, kw, sh, sw, ph, pw, oh, ow) in _level_params(num_levels, h, w):
        out = np.zeros((n, c, oh, ow), dtype=x.dtype)
        for oy in range(oh):
            for ox in range(ow):
                y0 = oy * sh - ph
                x0 = ox * sw - pw
                y1 = min(y0 + kh, h)
                x1 = min(x0 + kw, w)
                ys = max(y0, 0)
                xs = max(x0, 0)
                win = x[:, :, ys:y1, xs:x1]
                if pool_type == "max_pool":
                    out[:, :, oy, ox] = win.max(axis=(2, 3))
                else:
                    out[:, :, oy, ox] = win.sum(axis=(2, 3)) / float(kh * kw)
        outs.append(out.reshape(n, -1))
    return np.concatenate(outs, axis=1)


if __name__ == "__main__":
    # Small shape consistent with the module's NCHW forward (orig: 2,256,13,13).
    key = jax.random.PRNGKey(0)
    x = jax.random.uniform(key, (2, 4, 16, 16), dtype=jnp.float32)
    num_levels = 3  # SPPLayer has no learnable parameters; num_levels is config.

    out_max = jax.block_until_ready(spp_layer(x, num_levels, "max_pool"))
    out_avg = jax.block_until_ready(spp_layer(x, num_levels, "avg_pool"))

    x_np = np.asarray(x)
    ref_max = spp_ref_numpy(x_np, num_levels, "max_pool")
    ref_avg = spp_ref_numpy(x_np, num_levels, "avg_pool")

    assert out_max.shape == (2, 4 * (1 + 4 + 9)), out_max.shape
    assert out_avg.shape == (2, 4 * (1 + 4 + 9)), out_avg.shape
    np.testing.assert_allclose(np.asarray(out_max), ref_max, rtol=1e-6, atol=1e-6)
    # avg path runs on the MXU; tolerate reduced-precision f32 matmul passes.
    np.testing.assert_allclose(np.asarray(out_avg), ref_avg, rtol=1e-2, atol=1e-2)
    print("KERNEL_OK")
</pallas_src>

<mosaic_0001>
module attributes {stable_mosaic.version = 11 : i64} {
  func.func @kernel(%arg0: i32, %arg1: i32, %arg2: memref<2x16x16x4xf32, #tpu.memory_space<vmem>>, %arg3: memref<2x14x4xf32, #tpu.memory_space<vmem>>) attributes {dimension_semantics = [#tpu.dimension_semantics<parallel>, #tpu.dimension_semantics<parallel>], iteration_bounds = array<i64: 1, 1>, scalar_prefetch = 0 : i64, scratch_operands = 0 : i64, tpu.core_type = #tpu.core_type<tc>, window_params = [{transform_indices = @transform_0, window_bounds = array<i64: 2, 16, 16, 4>}, {transform_indices = @transform_1, window_bounds = array<i64: 2, 14, 4>}]} {
    %c0 = arith.constant 0 : index
    %c0_0 = arith.constant 0 : index
    %c0_1 = arith.constant 0 : index
    %c0_2 = arith.constant 0 : index
    %0 = vector.load %arg2[%c0, %c0_0, %c0_1, %c0_2] : memref<2x16x16x4xf32, #tpu.memory_space<vmem>>, vector<1x16x16x4xf32>
    %1 = vector.shape_cast %0 : vector<1x16x16x4xf32> to vector<16x16x4xf32>
    %cst = arith.constant dense<0xFF800000> : vector<16x4xf32>
    %2 = vector.multi_reduction <maximumf>, %1, %cst [0] : vector<16x16x4xf32> to vector<16x4xf32>
    %cst_3 = arith.constant dense<0xFF800000> : vector<4xf32>
    %3 = vector.multi_reduction <maximumf>, %2, %cst_3 [0] : vector<16x4xf32> to vector<4xf32>
    %4 = vector.shape_cast %3 : vector<4xf32> to vector<1x4xf32>
    %c0_4 = arith.constant 0 : index
    %c0_5 = arith.constant 0 : index
    %c0_6 = arith.constant 0 : index
    %5 = vector.load %arg3[%c0_4, %c0_5, %c0_6] : memref<2x14x4xf32, #tpu.memory_space<vmem>>, vector<1x1x4xf32>
    %6 = vector.shape_cast %5 : vector<1x1x4xf32> to vector<1x4xf32>
    %7 = vector.shape_cast %4 : vector<1x4xf32> to vector<1x1x4xf32>
    tpu.vector_store %arg3[%c0_4, %c0_5, %c0_6], %7 {strides = array<i32>} : memref<2x14x4xf32, #tpu.memory_space<vmem>>, vector<1x1x4xf32>,
    %c0_7 = arith.constant 0 : index
    %c0_8 = arith.constant 0 : index
    %c0_9 = arith.constant 0 : index
    %c0_10 = arith.constant 0 : index
    %8 = vector.load %arg2[%c0_7, %c0_8, %c0_9, %c0_10] : memref<2x16x16x4xf32, #tpu.memory_space<vmem>>, vector<1x8x8x4xf32>
    %9 = vector.shape_cast %8 : vector<1x8x8x4xf32> to vector<8x8x4xf32>
    %cst_11 = arith.constant dense<0xFF800000> : vector<8x4xf32>
    %10 = vector.multi_reduction <maximumf>, %9, %cst_11 [0] : vector<8x8x4xf32> to vector<8x4xf32>
    %cst_12 = arith.constant dense<0xFF800000> : vector<4xf32>
    %11 = vector.multi_reduction <maximumf>, %10, %cst_12 [0] : vector<8x4xf32> to vector<4xf32>
    %12 = vector.shape_cast %11 : vector<4xf32> to vector<1x4xf32>
    %c0_13 = arith.constant 0 : index
    %c1 = arith.constant 1 : index
    %c0_14 = arith.constant 0 : index
    %13 = vector.load %arg3[%c0_13, %c1, %c0_14] : memref<2x14x4xf32, #tpu.memory_space<vmem>>, vector<1x1x4xf32>
    %14 = vector.shape_cast %13 : vector<1x1x4xf32> to vector<1x4xf32>
    %15 = vector.shape_cast %12 : vector<1x4xf32> to vector<1x1x4xf32>
    tpu.vector_store %arg3[%c0_13, %c1, %c0_14], %15 {strides = array<i32>} : memref<2x14x4xf32, #tpu.memory_space<vmem>>, vector<1x1x4xf32>,
    %c0_15 = arith.constant 0 : index
    %c0_16 = arith.constant 0 : index
    %c8 = arith.constant 8 : index
    %c0_17 = arith.constant 0 : index
    %16 = vector.load %arg2[%c0_15, %c0_16, %c8, %c0_17] : memref<2x16x16x4xf32, #tpu.memory_space<vmem>>, vector<1x8x8x4xf32>
    %17 = vector.shape_cast %16 : vector<1x8x8x4xf32> to vector<8x8x4xf32>
    %cst_18 = arith.constant dense<0xFF800000> : vector<8x4xf32>
    %18 = vector.multi_reduction <maximumf>, %17, %cst_18 [0] : vector<8x8x4xf32> to vector<8x4xf32>
    %cst_19 = arith.constant dense<0xFF800000> : vector<4xf32>
    %19 = vector.multi_reduction <maximumf>, %18, %cst_19 [0] : vector<8x4xf32> to vector<4xf32>
    %20 = vector.shape_cast %19 : vector<4xf32> to vector<1x4xf32>
    %c0_20 = arith.constant 0 : index
    %c2 = arith.constant 2 : index
    %c0_21 = arith.constant 0 : index
    %21 = vector.load %arg3[%c0_20, %c2, %c0_21] : memref<2x14x4xf32, #tpu.memory_space<vmem>>, vector<1x1x4xf32>
    %22 = vector.shape_cast %21 : vector<1x1x4xf32> to vector<1x4xf32>
    %23 = vector.shape_cast %20 : vector<1x4xf32> to vector<1x1x4xf32>
    tpu.vector_store %arg3[%c0_20, %c2, %c0_21], %23 {strides = array<i32>} : memref<2x14x4xf32, #tpu.memory_space<vmem>>, vector<1x1x4xf32>,
    %c0_22 = arith.constant 0 : index
    %c8_23 = arith.constant 8 : index
    %c0_24 = arith.constant 0 : index
    %c0_25 = arith.constant 0 : index
    %24 = vector.load %arg2[%c0_22, %c8_23, %c0_24, %c0_25] : memref<2x16x16x4xf32, #tpu.memory_space<vmem>>, vector<1x8x8x4xf32>
    %25 = vector.shape_cast %24 : vector<1x8x8x4xf32> to vector<8x8x4xf32>
    %cst_26 = arith.constant dense<0xFF800000> : vector<8x4xf32>
    %26 = vector.multi_reduction <maximumf>, %25, %cst_26 [0] : vector<8x8x4xf32> to vector<8x4xf32>
    %cst_27 = arith.constant dense<0xFF800000> : vector<4xf32>
    %27 = vector.multi_reduction <maximumf>, %26, %cst_27 [0] : vector<8x4xf32> to vector<4xf32>
    %28 = vector.shape_cast %27 : vector<4xf32> to vector<1x4xf32>
    %c0_28 = arith.constant 0 : index
    %c3 = arith.constant 3 : index
    %c0_29 = arith.constant 0 : index
    %29 = vector.load %arg3[%c0_28, %c3, %c0_29] : memref<2x14x4xf32, #tpu.memory_space<vmem>>, vector<1x1x4xf32>
    %30 = vector.shape_cast %29 : vector<1x1x4xf32> to vector<1x4xf32>
    %31 = vector.shape_cast %28 : vector<1x4xf32> to vector<1x1x4xf32>
    tpu.vector_store %arg3[%c0_28, %c3, %c0_29], %31 {strides = array<i32>} : memref<2x14x4xf32, #tpu.memory_space<vmem>>, vector<1x1x4xf32>,
    %c0_30 = arith.constant 0 : index
    %c8_31 = arith.constant 8 : index
    %c8_32 = arith.constant 8 : index
    %c0_33 = arith.constant 0 : index
    %32 = vector.load %arg2[%c0_30, %c8_31, %c8_32, %c0_33] : memref<2x16x16x4xf32, #tpu.memory_space<vmem>>, vector<1x8x8x4xf32>
    %33 = vector.shape_cast %32 : vector<1x8x8x4xf32> to vector<8x8x4xf32>
    %cst_34 = arith.constant dense<0xFF800000> : vector<8x4xf32>
    %34 = vector.multi_reduction <maximumf>, %33, %cst_34 [0] : vector<8x8x4xf32> to vector<8x4xf32>
    %cst_35 = arith.constant dense<0xFF800000> : vector<4xf32>
    %35 = vector.multi_reduction <maximumf>, %34, %cst_35 [0] : vector<8x4xf32> to vector<4xf32>
    %36 = vector.shape_cast %35 : vector<4xf32> to vector<1x4xf32>
    %c0_36 = arith.constant 0 : index
    %c4 = arith.constant 4 : index
    %c0_37 = arith.constant 0 : index
    %37 = vector.load %arg3[%c0_36, %c4, %c0_37] : memref<2x14x4xf32, #tpu.memory_space<vmem>>, vector<1x1x4xf32>
    %38 = vector.shape_cast %37 : vector<1x1x4xf32> to vector<1x4xf32>
    %39 = vector.shape_cast %36 : vector<1x4xf32> to vector<1x1x4xf32>
    tpu.vector_store %arg3[%c0_36, %c4, %c0_37], %39 {strides = array<i32>} : memref<2x14x4xf32, #tpu.memory_space<vmem>>, vector<1x1x4xf32>,
    %c0_38 = arith.constant 0 : index
    %c0_39 = arith.constant 0 : index
    %c0_40 = arith.constant 0 : index
    %c0_41 = arith.constant 0 : index
    %40 = vector.load %arg2[%c0_38, %c0_39, %c0_40, %c0_41] : memref<2x16x16x4xf32, #tpu.memory_space<vmem>>, vector<1x5x5x4xf32>
    %41 = vector.shape_cast %40 : vector<1x5x5x4xf32> to vector<5x5x4xf32>
    %cst_42 = arith.constant dense<0xFF800000> : vector<5x4xf32>
    %42 = vector.multi_reduction <maximumf>, %41, %cst_42 [0] : vector<5x5x4xf32> to vector<5x4xf32>
    %cst_43 = arith.constant dense<0xFF800000> : vector<4xf32>
    %43 = vector.multi_reduction <maximumf>, %42, %cst_43 [0] : vector<5x4xf32> to vector<4xf32>
    %44 = vector.shape_cast %43 : vector<4xf32> to vector<1x4xf32>
    %c0_44 = arith.constant 0 : index
    %c5 = arith.constant 5 : index
    %c0_45 = arith.constant 0 : index
    %45 = vector.load %arg3[%c0_44, %c5, %c0_45] : memref<2x14x4xf32, #tpu.memory_space<vmem>>, vector<1x1x4xf32>
    %46 = vector.shape_cast %45 : vector<1x1x4xf32> to vector<1x4xf32>
    %47 = vector.shape_cast %44 : vector<1x4xf32> to vector<1x1x4xf32>
    tpu.vector_store %arg3[%c0_44, %c5, %c0_45], %47 {strides = array<i32>} : memref<2x14x4xf32, #tpu.memory_space<vmem>>, vector<1x1x4xf32>,
    %c0_46 = arith.constant 0 : index
    %c0_47 = arith.constant 0 : index
    %c5_48 = arith.constant 5 : index
    %c0_49 = arith.constant 0 : index
    %48 = vector.load %arg2[%c0_46, %c0_47, %c5_48, %c0_49] : memref<2x16x16x4xf32, #tpu.memory_space<vmem>>, vector<1x5x6x4xf32>
    %49 = vector.shape_cast %48 : vector<1x5x6x4xf32> to vector<5x6x4xf32>
    %cst_50 = arith.constant dense<0xFF800000> : vector<6x4xf32>
    %50 = vector.multi_reduction <maximumf>, %49, %cst_50 [0] : vector<5x6x4xf32> to vector<6x4xf32>
    %cst_51 = arith.constant dense<0xFF800000> : vector<4xf32>
    %51 = vector.multi_reduction <maximumf>, %50, %cst_51 [0] : vector<6x4xf32> to vector<4xf32>
    %52 = vector.shape_cast %51 : vector<4xf32> to vector<1x4xf32>
    %c0_52 = arith.constant 0 : index
    %c6 = arith.constant 6 : index
    %c0_53 = arith.constant 0 : index
    %53 = vector.load %arg3[%c0_52, %c6, %c0_53] : memref<2x14x4xf32, #tpu.memory_space<vmem>>, vector<1x1x4xf32>
    %54 = vector.shape_cast %53 : vector<1x1x4xf32> to vector<1x4xf32>
    %55 = vector.shape_cast %52 : vector<1x4xf32> to vector<1x1x4xf32>
    tpu.vector_store %arg3[%c0_52, %c6, %c0_53], %55 {strides = array<i32>} : memref<2x14x4xf32, #tpu.memory_space<vmem>>, vector<1x1x4xf32>,
    %c0_54 = arith.constant 0 : index
    %c0_55 = arith.constant 0 : index
    %c11 = arith.constant 11 : index
    %c0_56 = arith.constant 0 : index
    %56 = vector.load %arg2[%c0_54, %c0_55, %c11, %c0_56] : memref<2x16x16x4xf32, #tpu.memory_space<vmem>>, vector<1x5x5x4xf32>
    %57 = vector.shape_cast %56 : vector<1x5x5x4xf32> to vector<5x5x4xf32>
    %cst_57 = arith.constant dense<0xFF800000> : vector<5x4xf32>
    %58 = vector.multi_reduction <maximumf>, %57, %cst_57 [0] : vector<5x5x4xf32> to vector<5x4xf32>
    %cst_58 = arith.constant dense<0xFF800000> : vector<4xf32>
    %59 = vector.multi_reduction <maximumf>, %58, %cst_58 [0] : vector<5x4xf32> to vector<4xf32>
    %60 = vector.shape_cast %59 : vector<4xf32> to vector<1x4xf32>
    %c0_59 = arith.constant 0 : index
    %c7 = arith.constant 7 : index
    %c0_60 = arith.constant 0 : index
    %61 = vector.load %arg3[%c0_59, %c7, %c0_60] : memref<2x14x4xf32, #tpu.memory_space<vmem>>, vector<1x1x4xf32>
    %62 = vector.shape_cast %61 : vector<1x1x4xf32> to vector<1x4xf32>
    %63 = vector.shape_cast %60 : vector<1x4xf32> to vector<1x1x4xf32>
    tpu.vector_store %arg3[%c0_59, %c7, %c0_60], %63 {strides = array<i32>} : memref<2x14x4xf32, #tpu.memory_space<vmem>>, vector<1x1x4xf32>,
    %c0_61 = arith.constant 0 : index
    %c5_62 = arith.constant 5 : index
    %c0_63 = arith.constant 0 : index
    %c0_64 = arith.constant 0 : index
    %64 = vector.load %arg2[%c0_61, %c5_62, %c0_63, %c0_64] : memref<2x16x16x4xf32, #tpu.memory_space<vmem>>, vector<1x6x5x4xf32>
    %65 = vector.shape_cast %64 : vector<1x6x5x4xf32> to vector<6x5x4xf32>
    %cst_65 = arith.constant dense<0xFF800000> : vector<5x4xf32>
    %66 = vector.multi_reduction <maximumf>, %65, %cst_65 [0] : vector<6x5x4xf32> to vector<5x4xf32>
    %cst_66 = arith.constant dense<0xFF800000> : vector<4xf32>
    %67 = vector.multi_reduction <maximumf>, %66, %cst_66 [0] : vector<5x4xf32> to vector<4xf32>
    %68 = vector.shape_cast %67 : vector<4xf32> to vector<1x4xf32>
    %c0_67 = arith.constant 0 : index
    %c8_68 = arith.constant 8 : index
    %c0_69 = arith.constant 0 : index
    %69 = vector.load %arg3[%c0_67, %c8_68, %c0_69] : memref<2x14x4xf32, #tpu.memory_space<vmem>>, vector<1x1x4xf32>
    %70 = vector.shape_cast %69 : vector<1x1x4xf32> to vector<1x4xf32>
    %71 = vector.shape_cast %68 : vector<1x4xf32> to vector<1x1x4xf32>
    tpu.vector_store %arg3[%c0_67, %c8_68, %c0_69], %71 {strides = array<i32>} : memref<2x14x4xf32, #tpu.memory_space<vmem>>, vector<1x1x4xf32>,
    %c0_70 = arith.constant 0 : index
    %c5_71 = arith.constant 5 : index
    %c5_72 = arith.constant 5 : index
    %c0_73 = arith.constant 0 : index
    %72 = vector.load %arg2[%c0_70, %c5_71, %c5_72, %c0_73] : memref<2x16x16x4xf32, #tpu.memory_space<vmem>>, vector<1x6x6x4xf32>
    %73 = vector.shape_cast %72 : vector<1x6x6x4xf32> to vector<6x6x4xf32>
    %cst_74 = arith.constant dense<0xFF800000> : vector<6x4xf32>
    %74 = vector.multi_reduction <maximumf>, %73, %cst_74 [0] : vector<6x6x4xf32> to vector<6x4xf32>
    %cst_75 = arith.constant dense<0xFF800000> : vector<4xf32>
    %75 = vector.multi_reduction <maximumf>, %74, %cst_75 [0] : vector<6x4xf32> to vector<4xf32>
    %76 = vector.shape_cast %75 : vector<4xf32> to vector<1x4xf32>
    %c0_76 = arith.constant 0 : index
    %c9 = arith.constant 9 : index
    %c0_77 = arith.constant 0 : index
    %77 = vector.load %arg3[%c0_76, %c9, %c0_77] : memref<2x14x4xf32, #tpu.memory_space<vmem>>, vector<1x1x4xf32>
    %78 = vector.shape_cast %77 : vector<1x1x4xf32> to vector<1x4xf32>
    %79 = vector.shape_cast %76 : vector<1x4xf32> to vector<1x1x4xf32>
    tpu.vector_store %arg3[%c0_76, %c9, %c0_77], %79 {strides = array<i32>} : memref<2x14x4xf32, #tpu.memory_space<vmem>>, vector<1x1x4xf32>,
    %c0_78 = arith.constant 0 : index
    %c5_79 = arith.constant 5 : index
    %c11_80 = arith.constant 11 : index
    %c0_81 = arith.constant 0 : index
    %80 = vector.load %arg2[%c0_78, %c5_79, %c11_80, %c0_81] : memref<2x16x16x4xf32, #tpu.memory_space<vmem>>, vector<1x6x5x4xf32>
    %81 = vector.shape_cast %80 : vector<1x6x5x4xf32> to vector<6x5x4xf32>
    %cst_82 = arith.constant dense<0xFF800000> : vector<5x4xf32>
    %82 = vector.multi_reduction <maximumf>, %81, %cst_82 [0] : vector<6x5x4xf32> to vector<5x4xf32>
    %cst_83 = arith.constant dense<0xFF800000> : vector<4xf32>
    %83 = vector.multi_reduction <maximumf>, %82, %cst_83 [0] : vector<5x4xf32> to vector<4xf32>
    %84 = vector.shape_cast %83 : vector<4xf32> to vector<1x4xf32>
    %c0_84 = arith.constant 0 : index
    %c10 = arith.constant 10 : index
    %c0_85 = arith.constant 0 : index
    %85 = vector.load %arg3[%c0_84, %c10, %c0_85] : memref<2x14x4xf32, #tpu.memory_space<vmem>>, vector<1x1x4xf32>
    %86 = vector.shape_cast %85 : vector<1x1x4xf32> to vector<1x4xf32>
    %87 = vector.shape_cast %84 : vector<1x4xf32> to vector<1x1x4xf32>
    tpu.vector_store %arg3[%c0_84, %c10, %c0_85], %87 {strides = array<i32>} : memref<2x14x4xf32, #tpu.memory_space<vmem>>, vector<1x1x4xf32>,
    %c0_86 = arith.constant 0 : index
    %c11_87 = arith.constant 11 : index
    %c0_88 = arith.constant 0 : index
    %c0_89 = arith.constant 0 : index
    %88 = vector.load %arg2[%c0_86, %c11_87, %c0_88, %c0_89] : memref<2x16x16x4xf32, #tpu.memory_space<vmem>>, vector<1x5x5x4xf32>
    %89 = vector.shape_cast %88 : vector<1x5x5x4xf32> to vector<5x5x4xf32>
    %cst_90 = arith.constant dense<0xFF800000> : vector<5x4xf32>
    %90 = vector.multi_reduction <maximumf>, %89, %cst_90 [0] : vector<5x5x4xf32> to vector<5x4xf32>
    %cst_91 = arith.constant dense<0xFF800000> : vector<4xf32>
    %91 = vector.multi_reduction <maximumf>, %90, %cst_91 [0] : vector<5x4xf32> to vector<4xf32>
    %92 = vector.shape_cast %91 : vector<4xf32> to vector<1x4xf32>
    %c0_92 = arith.constant 0 : index
    %c11_93 = arith.constant 11 : index
    %c0_94 = arith.constant 0 : index
    %93 = vector.load %arg3[%c0_92, %c11_93, %c0_94] : memref<2x14x4xf32, #tpu.memory_space<vmem>>, vector<1x1x4xf32>
    %94 = vector.shape_cast %93 : vector<1x1x4xf32> to vector<1x4xf32>
    %95 = vector.shape_cast %92 : vector<1x4xf32> to vector<1x1x4xf32>
    tpu.vector_store %arg3[%c0_92, %c11_93, %c0_94], %95 {strides = array<i32>} : memref<2x14x4xf32, #tpu.memory_space<vmem>>, vector<1x1x4xf32>,
    %c0_95 = arith.constant 0 : index
    %c11_96 = arith.constant 11 : index
    %c5_97 = arith.constant 5 : index
    %c0_98 = arith.constant 0 : index
    %96 = vector.load %arg2[%c0_95, %c11_96, %c5_97, %c0_98] : memref<2x16x16x4xf32, #tpu.memory_space<vmem>>, vector<1x5x6x4xf32>
    %97 = vector.shape_cast %96 : vector<1x5x6x4xf32> to vector<5x6x4xf32>
    %cst_99 = arith.constant dense<0xFF800000> : vector<6x4xf32>
    %98 = vector.multi_reduction <maximumf>, %97, %cst_99 [0] : vector<5x6x4xf32> to vector<6x4xf32>
    %cst_100 = arith.constant dense<0xFF800000> : vector<4xf32>
    %99 = vector.multi_reduction <maximumf>, %98, %cst_100 [0] : vector<6x4xf32> to vector<4xf32>
    %100 = vector.shape_cast %99 : vector<4xf32> to vector<1x4xf32>
    %c0_101 = arith.constant 0 : index
    %c12 = arith.constant 12 : index
    %c0_102 = arith.constant 0 : index
    %101 = vector.load %arg3[%c0_101, %c12, %c0_102] : memref<2x14x4xf32, #tpu.memory_space<vmem>>, vector<1x1x4xf32>
    %102 = vector.shape_cast %101 : vector<1x1x4xf32> to vector<1x4xf32>
    %103 = vector.shape_cast %100 : vector<1x4xf32> to vector<1x1x4xf32>
    tpu.vector_store %arg3[%c0_101, %c12, %c0_102], %103 {strides = array<i32>} : memref<2x14x4xf32, #tpu.memory_space<vmem>>, vector<1x1x4xf32>,
    %c0_103 = arith.constant 0 : index
    %c11_104 = arith.constant 11 : index
    %c11_105 = arith.constant 11 : index
    %c0_106 = arith.constant 0 : index
    %104 = vector.load %arg2[%c0_103, %c11_104, %c11_105, %c0_106] : memref<2x16x16x4xf32, #tpu.memory_space<vmem>>, vector<1x5x5x4xf32>
    %105 = vector.shape_cast %104 : vector<1x5x5x4xf32> to vector<5x5x4xf32>
    %cst_107 = arith.constant dense<0xFF800000> : vector<5x4xf32>
    %106 = vector.multi_reduction <maximumf>, %105, %cst_107 [0] : vector<5x5x4xf32> to vector<5x4xf32>
    %cst_108 = arith.constant dense<0xFF800000> : vector<4xf32>
    %107 = vector.multi_reduction <maximumf>, %106, %cst_108 [0] : vector<5x4xf32> to vector<4xf32>
    %108 = vector.shape_cast %107 : vector<4xf32> to vector<1x4xf32>
    %c0_109 = arith.constant 0 : index
    %c13 = arith.constant 13 : index
    %c0_110 = arith.constant 0 : index
    %109 = vector.load %arg3[%c0_109, %c13, %c0_110] : memref<2x14x4xf32, #tpu.memory_space<vmem>>, vector<1x1x4xf32>
    %110 = vector.shape_cast %109 : vector<1x1x4xf32> to vector<1x4xf32>
    %111 = vector.shape_cast %108 : vector<1x4xf32> to vector<1x1x4xf32>
    tpu.vector_store %arg3[%c0_109, %c13, %c0_110], %111 {strides = array<i32>} : memref<2x14x4xf32, #tpu.memory_space<vmem>>, vector<1x1x4xf32>,
    %c1_111 = arith.constant 1 : index
    %c0_112 = arith.constant 0 : index
    %c0_113 = arith.constant 0 : index
    %c0_114 = arith.constant 0 : index
    %112 = vector.load %arg2[%c1_111, %c0_112, %c0_113, %c0_114] : memref<2x16x16x4xf32, #tpu.memory_space<vmem>>, vector<1x16x16x4xf32>
    %113 = vector.shape_cast %112 : vector<1x16x16x4xf32> to vector<16x16x4xf32>
    %cst_115 = arith.constant dense<0xFF800000> : vector<16x4xf32>
    %114 = vector.multi_reduction <maximumf>, %113, %cst_115 [0] : vector<16x16x4xf32> to vector<16x4xf32>
    %cst_116 = arith.constant dense<0xFF800000> : vector<4xf32>
    %115 = vector.multi_reduction <maximumf>, %114, %cst_116 [0] : vector<16x4xf32> to vector<4xf32>
    %116 = vector.shape_cast %115 : vector<4xf32> to vector<1x4xf32>
    %c1_117 = arith.constant 1 : index
    %c0_118 = arith.constant 0 : index
    %c0_119 = arith.constant 0 : index
    %117 = vector.load %arg3[%c1_117, %c0_118, %c0_119] : memref<2x14x4xf32, #tpu.memory_space<vmem>>, vector<1x1x4xf32>
    %118 = vector.shape_cast %117 : vector<1x1x4xf32> to vector<1x4xf32>
    %119 = vector.shape_cast %116 : vector<1x4xf32> to vector<1x1x4xf32>
    tpu.vector_store %arg3[%c1_117, %c0_118, %c0_119], %119 {strides = array<i32>} : memref<2x14x4xf32, #tpu.memory_space<vmem>>, vector<1x1x4xf32>,
    %c1_120 = arith.constant 1 : index
    %c0_121 = arith.constant 0 : index
    %c0_122 = arith.constant 0 : index
    %c0_123 = arith.constant 0 : index
    %120 = vector.load %arg2[%c1_120, %c0_121, %c0_122, %c0_123] : memref<2x16x16x4xf32, #tpu.memory_space<vmem>>, vector<1x8x8x4xf32>
    %121 = vector.shape_cast %120 : vector<1x8x8x4xf32> to vector<8x8x4xf32>
    %cst_124 = arith.constant dense<0xFF800000> : vector<8x4xf32>
    %122 = vector.multi_reduction <maximumf>, %121, %cst_124 [0] : vector<8x8x4xf32> to vector<8x4xf32>
    %cst_125 = arith.constant dense<0xFF800000> : vector<4xf32>
    %123 = vector.multi_reduction <maximumf>, %122, %cst_125 [0] : vector<8x4xf32> to vector<4xf32>
    %124 = vector.shape_cast %123 : vector<4xf32> to vector<1x4xf32>
    %c1_126 = arith.constant 1 : index
    %c1_127 = arith.constant 1 : index
    %c0_128 = arith.constant 0 : index
    %125 = vector.load %arg3[%c1_126, %c1_127, %c0_128] : memref<2x14x4xf32, #tpu.memory_space<vmem>>, vector<1x1x4xf32>
    %126 = vector.shape_cast %125 : vector<1x1x4xf32> to vector<1x4xf32>
    %127 = vector.shape_cast %124 : vector<1x4xf32> to vector<1x1x4xf32>
    tpu.vector_store %arg3[%c1_126, %c1_127, %c0_128], %127 {strides = array<i32>} : memref<2x14x4xf32, #tpu.memory_space<vmem>>, vector<1x1x4xf32>,
    %c1_129 = arith.constant 1 : index
    %c0_130 = arith.constant 0 : index
    %c8_131 = arith.constant 8 : index
    %c0_132 = arith.constant 0 : index
    %128 = vector.load %arg2[%c1_129, %c0_130, %c8_131, %c0_132] : memref<2x16x16x4xf32, #tpu.memory_space<vmem>>, vector<1x8x8x4xf32>
    %129 = vector.shape_cast %128 : vector<1x8x8x4xf32> to vector<8x8x4xf32>
    %cst_133 = arith.constant dense<0xFF800000> : vector<8x4xf32>
    %130 = vector.multi_reduction <maximumf>, %129, %cst_133 [0] : vector<8x8x4xf32> to vector<8x4xf32>
    %cst_134 = arith.constant dense<0xFF800000> : vector<4xf32>
    %131 = vector.multi_reduction <maximumf>, %130, %cst_134 [0] : vector<8x4xf32> to vector<4xf32>
    %132 = vector.shape_cast %131 : vector<4xf32> to vector<1x4xf32>
    %c1_135 = arith.constant 1 : index
    %c2_136 = arith.constant 2 : index
    %c0_137 = arith.constant 0 : index
    %133 = vector.load %arg3[%c1_135, %c2_136, %c0_137] : memref<2x14x4xf32, #tpu.memory_space<vmem>>, vector<1x1x4xf32>
    %134 = vector.shape_cast %133 : vector<1x1x4xf32> to vector<1x4xf32>
    %135 = vector.shape_cast %132 : vector<1x4xf32> to vector<1x1x4xf32>
    tpu.vector_store %arg3[%c1_135, %c2_136, %c0_137], %135 {strides = array<i32>} : memref<2x14x4xf32, #tpu.memory_space<vmem>>, vector<1x1x4xf32>,
    %c1_138 = arith.constant 1 : index
    %c8_139 = arith.constant 8 : index
    %c0_140 = arith.constant 0 : index
    %c0_141 = arith.constant 0 : index
    %136 = vector.load %arg2[%c1_138, %c8_139, %c0_140, %c0_141] : memref<2x16x16x4xf32, #tpu.memory_space<vmem>>, vector<1x8x8x4xf32>
    %137 = vector.shape_cast %136 : vector<1x8x8x4xf32> to vector<8x8x4xf32>
    %cst_142 = arith.constant dense<0xFF800000> : vector<8x4xf32>
    %138 = vector.multi_reduction <maximumf>, %137, %cst_142 [0] : vector<8x8x4xf32> to vector<8x4xf32>
    %cst_143 = arith.constant dense<0xFF800000> : vector<4xf32>
    %139 = vector.multi_reduction <maximumf>, %138, %cst_143 [0] : vector<8x4xf32> to vector<4xf32>
    %140 = vector.shape_cast %139 : vector<4xf32> to vector<1x4xf32>
    %c1_144 = arith.constant 1 : index
    %c3_145 = arith.constant 3 : index
    %c0_146 = arith.constant 0 : index
    %141 = vector.load %arg3[%c1_144, %c3_145, %c0_146] : memref<2x14x4xf32, #tpu.memory_space<vmem>>, vector<1x1x4xf32>
    %142 = vector.shape_cast %141 : vector<1x1x4xf32> to vector<1x4xf32>
    %143 = vector.shape_cast %140 : vector<1x4xf32> to vector<1x1x4xf32>
    tpu.vector_store %arg3[%c1_144, %c3_145, %c0_146], %143 {strides = array<i32>} : memref<2x14x4xf32, #tpu.memory_space<vmem>>, vector<1x1x4xf32>,
    %c1_147 = arith.constant 1 : index
    %c8_148 = arith.constant 8 : index
    %c8_149 = arith.constant 8 : index
    %c0_150 = arith.constant 0 : index
    %144 = vector.load %arg2[%c1_147, %c8_148, %c8_149, %c0_150] : memref<2x16x16x4xf32, #tpu.memory_space<vmem>>, vector<1x8x8x4xf32>
    %145 = vector.shape_cast %144 : vector<1x8x8x4xf32> to vector<8x8x4xf32>
    %cst_151 = arith.constant dense<0xFF800000> : vector<8x4xf32>
    %146 = vector.multi_reduction <maximumf>, %145, %cst_151 [0] : vector<8x8x4xf32> to vector<8x4xf32>
    %cst_152 = arith.constant dense<0xFF800000> : vector<4xf32>
    %147 = vector.multi_reduction <maximumf>, %146, %cst_152 [0] : vector<8x4xf32> to vector<4xf32>
    %148 = vector.shape_cast %147 : vector<4xf32> to vector<1x4xf32>
    %c1_153 = arith.constant 1 : index
    %c4_154 = arith.constant 4 : index
    %c0_155 = arith.constant 0 : index
    %149 = vector.load %arg3[%c1_153, %c4_154, %c0_155] : memref<2x14x4xf32, #tpu.memory_space<vmem>>, vector<1x1x4xf32>
    %150 = vector.shape_cast %149 : vector<1x1x4xf32> to vector<1x4xf32>
    %151 = vector.shape_cast %148 : vector<1x4xf32> to vector<1x1x4xf32>
    tpu.vector_store %arg3[%c1_153, %c4_154, %c0_155], %151 {strides = array<i32>} : memref<2x14x4xf32, #tpu.memory_space<vmem>>, vector<1x1x4xf32>,
    %c1_156 = arith.constant 1 : index
    %c0_157 = arith.constant 0 : index
    %c0_158 = arith.constant 0 : index
    %c0_159 = arith.constant 0 : index
    %152 = vector.load %arg2[%c1_156, %c0_157, %c0_158, %c0_159] : memref<2x16x16x4xf32, #tpu.memory_space<vmem>>, vector<1x5x5x4xf32>
    %153 = vector.shape_cast %152 : vector<1x5x5x4xf32> to vector<5x5x4xf32>
    %cst_160 = arith.constant dense<0xFF800000> : vector<5x4xf32>
    %154 = vector.multi_reduction <maximumf>, %153, %cst_160 [0] : vector<5x5x4xf32> to vector<5x4xf32>
    %cst_161 = arith.constant dense<0xFF800000> : vector<4xf32>
    %155 = vector.multi_reduction <maximumf>, %154, %cst_161 [0] : vector<5x4xf32> to vector<4xf32>
    %156 = vector.shape_cast %155 : vector<4xf32> to vector<1x4xf32>
    %c1_162 = arith.constant 1 : index
    %c5_163 = arith.constant 5 : index
    %c0_164 = arith.constant 0 : index
    %157 = vector.load %arg3[%c1_162, %c5_163, %c0_164] : memref<2x14x4xf32, #tpu.memory_space<vmem>>, vector<1x1x4xf32>
    %158 = vector.shape_cast %157 : vector<1x1x4xf32> to vector<1x4xf32>
    %159 = vector.shape_cast %156 : vector<1x4xf32> to vector<1x1x4xf32>
    tpu.vector_store %arg3[%c1_162, %c5_163, %c0_164], %159 {strides = array<i32>} : memref<2x14x4xf32, #tpu.memory_space<vmem>>, vector<1x1x4xf32>,
    %c1_165 = arith.constant 1 : index
    %c0_166 = arith.constant 0 : index
    %c5_167 = arith.constant 5 : index
    %c0_168 = arith.constant 0 : index
    %160 = vector.load %arg2[%c1_165, %c0_166, %c5_167, %c0_168] : memref<2x16x16x4xf32, #tpu.memory_space<vmem>>, vector<1x5x6x4xf32>
    %161 = vector.shape_cast %160 : vector<1x5x6x4xf32> to vector<5x6x4xf32>
    %cst_169 = arith.constant dense<0xFF800000> : vector<6x4xf32>
    %162 = vector.multi_reduction <maximumf>, %161, %cst_169 [0] : vector<5x6x4xf32> to vector<6x4xf32>
    %cst_170 = arith.constant dense<0xFF800000> : vector<4xf32>
    %163 = vector.multi_reduction <maximumf>, %162, %cst_170 [0] : vector<6x4xf32> to vector<4xf32>
    %164 = vector.shape_cast %163 : vector<4xf32> to vector<1x4xf32>
    %c1_171 = arith.constant 1 : index
    %c6_172 = arith.constant 6 : index
    %c0_173 = arith.constant 0 : index
    %165 = vector.load %arg3[%c1_171, %c6_172, %c0_173] : memref<2x14x4xf32, #tpu.memory_space<vmem>>, vector<1x1x4xf32>
    %166 = vector.shape_cast %165 : vector<1x1x4xf32> to vector<1x4xf32>
    %167 = vector.shape_cast %164 : vector<1x4xf32> to vector<1x1x4xf32>
    tpu.vector_store %arg3[%c1_171, %c6_172, %c0_173], %167 {strides = array<i32>} : memref<2x14x4xf32, #tpu.memory_space<vmem>>, vector<1x1x4xf32>,
    %c1_174 = arith.constant 1 : index
    %c0_175 = arith.constant 0 : index
    %c11_176 = arith.constant 11 : index
    %c0_177 = arith.constant 0 : index
    %168 = vector.load %arg2[%c1_174, %c0_175, %c11_176, %c0_177] : memref<2x16x16x4xf32, #tpu.memory_space<vmem>>, vector<1x5x5x4xf32>
    %169 = vector.shape_cast %168 : vector<1x5x5x4xf32> to vector<5x5x4xf32>
    %cst_178 = arith.constant dense<0xFF800000> : vector<5x4xf32>
    %170 = vector.multi_reduction <maximumf>, %169, %cst_178 [0] : vector<5x5x4xf32> to vector<5x4xf32>
    %cst_179 = arith.constant dense<0xFF800000> : vector<4xf32>
    %171 = vector.multi_reduction <maximumf>, %170, %cst_179 [0] : vector<5x4xf32> to vector<4xf32>
    %172 = vector.shape_cast %171 : vector<4xf32> to vector<1x4xf32>
    %c1_180 = arith.constant 1 : index
    %c7_181 = arith.constant 7 : index
    %c0_182 = arith.constant 0 : index
    %173 = vector.load %arg3[%c1_180, %c7_181, %c0_182] : memref<2x14x4xf32, #tpu.memory_space<vmem>>, vector<1x1x4xf32>
    %174 = vector.shape_cast %173 : vector<1x1x4xf32> to vector<1x4xf32>
    %175 = vector.shape_cast %172 : vector<1x4xf32> to vector<1x1x4xf32>
    tpu.vector_store %arg3[%c1_180, %c7_181, %c0_182], %175 {strides = array<i32>} : memref<2x14x4xf32, #tpu.memory_space<vmem>>, vector<1x1x4xf32>,
    %c1_183 = arith.constant 1 : index
    %c5_184 = arith.constant 5 : index
    %c0_185 = arith.constant 0 : index
    %c0_186 = arith.constant 0 : index
    %176 = vector.load %arg2[%c1_183, %c5_184, %c0_185, %c0_186] : memref<2x16x16x4xf32, #tpu.memory_space<vmem>>, vector<1x6x5x4xf32>
    %177 = vector.shape_cast %176 : vector<1x6x5x4xf32> to vector<6x5x4xf32>
    %cst_187 = arith.constant dense<0xFF800000> : vector<5x4xf32>
    %178 = vector.multi_reduction <maximumf>, %177, %cst_187 [0] : vector<6x5x4xf32> to vector<5x4xf32>
    %cst_188 = arith.constant dense<0xFF800000> : vector<4xf32>
    %179 = vector.multi_reduction <maximumf>, %178, %cst_188 [0] : vector<5x4xf32> to vector<4xf32>
    %180 = vector.shape_cast %179 : vector<4xf32> to vector<1x4xf32>
    %c1_189 = arith.constant 1 : index
    %c8_190 = arith.constant 8 : index
    %c0_191 = arith.constant 0 : index
    %181 = vector.load %arg3[%c1_189, %c8_190, %c0_191] : memref<2x14x4xf32, #tpu.memory_space<vmem>>, vector<1x1x4xf32>
    %182 = vector.shape_cast %181 : vector<1x1x4xf32> to vector<1x4xf32>
    %183 = vector.shape_cast %180 : vector<1x4xf32> to vector<1x1x4xf32>
    tpu.vector_store %arg3[%c1_189, %c8_190, %c0_191], %183 {strides = array<i32>} : memref<2x14x4xf32, #tpu.memory_space<vmem>>, vector<1x1x4xf32>,
    %c1_192 = arith.constant 1 : index
    %c5_193 = arith.constant 5 : index
    %c5_194 = arith.constant 5 : index
    %c0_195 = arith.constant 0 : index
    %184 = vector.load %arg2[%c1_192, %c5_193, %c5_194, %c0_195] : memref<2x16x16x4xf32, #tpu.memory_space<vmem>>, vector<1x6x6x4xf32>
    %185 = vector.shape_cast %184 : vector<1x6x6x4xf32> to vector<6x6x4xf32>
    %cst_196 = arith.constant dense<0xFF800000> : vector<6x4xf32>
    %186 = vector.multi_reduction <maximumf>, %185, %cst_196 [0] : vector<6x6x4xf32> to vector<6x4xf32>
    %cst_197 = arith.constant dense<0xFF800000> : vector<4xf32>
    %187 = vector.multi_reduction <maximumf>, %186, %cst_197 [0] : vector<6x4xf32> to vector<4xf32>
    %188 = vector.shape_cast %187 : vector<4xf32> to vector<1x4xf32>
    %c1_198 = arith.constant 1 : index
    %c9_199 = arith.constant 9 : index
    %c0_200 = arith.constant 0 : index
    %189 = vector.load %arg3[%c1_198, %c9_199, %c0_200] : memref<2x14x4xf32, #tpu.memory_space<vmem>>, vector<1x1x4xf32>
    %190 = vector.shape_cast %189 : vector<1x1x4xf32> to vector<1x4xf32>
    %191 = vector.shape_cast %188 : vector<1x4xf32> to vector<1x1x4xf32>
    tpu.vector_store %arg3[%c1_198, %c9_199, %c0_200], %191 {strides = array<i32>} : memref<2x14x4xf32, #tpu.memory_space<vmem>>, vector<1x1x4xf32>,
    %c1_201 = arith.constant 1 : index
    %c5_202 = arith.constant 5 : index
    %c11_203 = arith.constant 11 : index
    %c0_204 = arith.constant 0 : index
    %192 = vector.load %arg2[%c1_201, %c5_202, %c11_203, %c0_204] : memref<2x16x16x4xf32, #tpu.memory_space<vmem>>, vector<1x6x5x4xf32>
    %193 = vector.shape_cast %192 : vector<1x6x5x4xf32> to vector<6x5x4xf32>
    %cst_205 = arith.constant dense<0xFF800000> : vector<5x4xf32>
    %194 = vector.multi_reduction <maximumf>, %193, %cst_205 [0] : vector<6x5x4xf32> to vector<5x4xf32>
    %cst_206 = arith.constant dense<0xFF800000> : vector<4xf32>
    %195 = vector.multi_reduction <maximumf>, %194, %cst_206 [0] : vector<5x4xf32> to vector<4xf32>
    %196 = vector.shape_cast %195 : vector<4xf32> to vector<1x4xf32>
    %c1_207 = arith.constant 1 : index
    %c10_208 = arith.constant 10 : index
    %c0_209 = arith.constant 0 : index
    %197 = vector.load %arg3[%c1_207, %c10_208, %c0_209] : memref<2x14x4xf32, #tpu.memory_space<vmem>>, vector<1x1x4xf32>
    %198 = vector.shape_cast %197 : vector<1x1x4xf32> to vector<1x4xf32>
    %199 = vector.shape_cast %196 : vector<1x4xf32> to vector<1x1x4xf32>
    tpu.vector_store %arg3[%c1_207, %c10_208, %c0_209], %199 {strides = array<i32>} : memref<2x14x4xf32, #tpu.memory_space<vmem>>, vector<1x1x4xf32>,
    %c1_210 = arith.constant 1 : index
    %c11_211 = arith.constant 11 : index
    %c0_212 = arith.constant 0 : index
    %c0_213 = arith.constant 0 : index
    %200 = vector.load %arg2[%c1_210, %c11_211, %c0_212, %c0_213] : memref<2x16x16x4xf32, #tpu.memory_space<vmem>>, vector<1x5x5x4xf32>
    %201 = vector.shape_cast %200 : vector<1x5x5x4xf32> to vector<5x5x4xf32>
    %cst_214 = arith.constant dense<0xFF800000> : vector<5x4xf32>
    %202 = vector.multi_reduction <maximumf>, %201, %cst_214 [0] : vector<5x5x4xf32> to vector<5x4xf32>
    %cst_215 = arith.constant dense<0xFF800000> : vector<4xf32>
    %203 = vector.multi_reduction <maximumf>, %202, %cst_215 [0] : vector<5x4xf32> to vector<4xf32>
    %204 = vector.shape_cast %203 : vector<4xf32> to vector<1x4xf32>
    %c1_216 = arith.constant 1 : index
    %c11_217 = arith.constant 11 : index
    %c0_218 = arith.constant 0 : index
    %205 = vector.load %arg3[%c1_216, %c11_217, %c0_218] : memref<2x14x4xf32, #tpu.memory_space<vmem>>, vector<1x1x4xf32>
    %206 = vector.shape_cast %205 : vector<1x1x4xf32> to vector<1x4xf32>
    %207 = vector.shape_cast %204 : vector<1x4xf32> to vector<1x1x4xf32>
    tpu.vector_store %arg3[%c1_216, %c11_217, %c0_218], %207 {strides = array<i32>} : memref<2x14x4xf32, #tpu.memory_space<vmem>>, vector<1x1x4xf32>,
    %c1_219 = arith.constant 1 : index
    %c11_220 = arith.constant 11 : index
    %c5_221 = arith.constant 5 : index
    %c0_222 = arith.constant 0 : index
    %208 = vector.load %arg2[%c1_219, %c11_220, %c5_221, %c0_222] : memref<2x16x16x4xf32, #tpu.memory_space<vmem>>, vector<1x5x6x4xf32>
    %209 = vector.shape_cast %208 : vector<1x5x6x4xf32> to vector<5x6x4xf32>
    %cst_223 = arith.constant dense<0xFF800000> : vector<6x4xf32>
    %210 = vector.multi_reduction <maximumf>, %209, %cst_223 [0] : vector<5x6x4xf32> to vector<6x4xf32>
    %cst_224 = arith.constant dense<0xFF800000> : vector<4xf32>
    %211 = vector.multi_reduction <maximumf>, %210, %cst_224 [0] : vector<6x4xf32> to vector<4xf32>
    %212 = vector.shape_cast %211 : vector<4xf32> to vector<1x4xf32>
    %c1_225 = arith.constant 1 : index
    %c12_226 = arith.constant 12 : index
    %c0_227 = arith.constant 0 : index
    %213 = vector.load %arg3[%c1_225, %c12_226, %c0_227] : memref<2x14x4xf32, #tpu.memory_space<vmem>>, vector<1x1x4xf32>
    %214 = vector.shape_cast %213 : vector<1x1x4xf32> to vector<1x4xf32>
    %215 = vector.shape_cast %212 : vector<1x4xf32> to vector<1x1x4xf32>
    tpu.vector_store %arg3[%c1_225, %c12_226, %c0_227], %215 {strides = array<i32>} : memref<2x14x4xf32, #tpu.memory_space<vmem>>, vector<1x1x4xf32>,
    %c1_228 = arith.constant 1 : index
    %c11_229 = arith.constant 11 : index
    %c11_230 = arith.constant 11 : index
    %c0_231 = arith.constant 0 : index
    %216 = vector.load %arg2[%c1_228, %c11_229, %c11_230, %c0_231] : memref<2x16x16x4xf32, #tpu.memory_space<vmem>>, vector<1x5x5x4xf32>
    %217 = vector.shape_cast %216 : vector<1x5x5x4xf32> to vector<5x5x4xf32>
    %cst_232 = arith.constant dense<0xFF800000> : vector<5x4xf32>
    %218 = vector.multi_reduction <maximumf>, %217, %cst_232 [0] : vector<5x5x4xf32> to vector<5x4xf32>
    %cst_233 = arith.constant dense<0xFF800000> : vector<4xf32>
    %219 = vector.multi_reduction <maximumf>, %218, %cst_233 [0] : vector<5x4xf32> to vector<4xf32>
    %220 = vector.shape_cast %219 : vector<4xf32> to vector<1x4xf32>
    %c1_234 = arith.constant 1 : index
    %c13_235 = arith.constant 13 : index
    %c0_236 = arith.constant 0 : index
    %221 = vector.load %arg3[%c1_234, %c13_235, %c0_236] : memref<2x14x4xf32, #tpu.memory_space<vmem>>, vector<1x1x4xf32>
    %222 = vector.shape_cast %221 : vector<1x1x4xf32> to vector<1x4xf32>
    %223 = vector.shape_cast %220 : vector<1x4xf32> to vector<1x1x4xf32>
    tpu.vector_store %arg3[%c1_234, %c13_235, %c0_236], %223 {strides = array<i32>} : memref<2x14x4xf32, #tpu.memory_space<vmem>>, vector<1x1x4xf32>,
    return
  }
  func.func @transform_0(%arg0: i32, %arg1: i32) -> (i32, i32, i32, i32) {
    %c0_i32 = arith.constant 0 : i32
    %c0_i32_0 = arith.constant 0 : i32
    %c0_i32_1 = arith.constant 0 : i32
    return %arg0, %c0_i32, %c0_i32_0, %arg1 : i32, i32, i32, i32
  }
  func.func @transform_1(%arg0: i32, %arg1: i32) -> (i32, i32, i32) {
    %c0_i32 = arith.constant 0 : i32
    %c0_i32_0 = arith.constant 0 : i32
    return %arg0, %c0_i32, %arg1 : i32, i32, i32
  }
}

</mosaic_0001>

<bundles_post_ra>
// kernel: tpu_custom_call.1
= control target key start
LH: loop header
LB: loop body
LE: loop exit
PB: predicated region body
PF: predicated region fallthrough
CT: control target
= control target key end

     0   :  { %vm40_vm0 = vcmask 31744   ;;  %vm244_vm1 = vcmask 28672   ;;  %vm267_vm2 = vcmask 29696   ;;  %vm112_vm3 = vcmask 24576   ;;  %s2009_s0 = inlined_call_operand.vmem [shape: f32[2,16,16,4], index: 0, kind: input, shape index: {}]   ;;  %s2010_s1 = inlined_call_operand.vmem [shape: f32[2,14,4], index: 1, kind: output, shape index: {}]  }
   0x1   :  { %v8_v0 = vld [vmem:[%s2009_s0] sm:$0xff]  ;;  %v9_v1 = vld [vmem:[%s2009_s0 + $0x8] sm:$0xff]  ;;  %v10_v2 = vld [vmem:[%s2009_s0 + $0x10] sm:$0xff] }
   0x2   :  { %v11_v3 = vld [vmem:[%s2009_s0 + $0x18] sm:$0xff]  ;;  %v12_v4 = vld [vmem:[%s2009_s0 + $0x20] sm:$0xff]  ;;  %v13_v5 = vld [vmem:[%s2009_s0 + $0x28] sm:$0xff]  ;;  %v1098_v6 = vsel %vm40_vm0, %v8_v0, -inf  ;;  %v1101_v7 = vsel %vm40_vm0, %v10_v2, -inf  ;;  %v1104_v8 = vsel %vm40_vm0, %v9_v1, -inf }
   0x3   :  { %v14_v9 = vld [vmem:[%s2009_s0 + $0x30] sm:$0xff]  ;;  %v15_v10 = vld [vmem:[%s2009_s0 + $0x38] sm:$0xff]  ;;  %v16_v11 = vld [vmem:[%s2009_s0 + $0x40] sm:$0xff]  ;;  %v1116_v12 = vsel %vm40_vm0, %v12_v4, -inf  ;;  %v1119_v13 = vsel %vm40_vm0, %v11_v3, -inf  ;;  %v1122_v14 = vsel %vm40_vm0, %v13_v5, -inf }
   0x4   :  { %v17_v15 = vld [vmem:[%s2009_s0 + $0x48] sm:$0xff]  ;;  %v18_v16 = vld [vmem:[%s2009_s0 + $0x50] sm:$0xff]  ;;  %v19_v17 = vld [vmem:[%s2009_s0 + $0x58] sm:$0xff]  ;;  %v44_v18 = vmax.f32 %v1098_v6, %v1116_v12  ;;  %v1136_v19 = vsel %vm40_vm0, %v14_v9, -inf  ;;  %v1139_v20 = vsel %vm40_vm0, %v16_v11, -inf  ;;  %v75_v21 = vmax.f32 %v1104_v8, %v1122_v14 }
   0x5   :  { %v20_v22 = vld [vmem:[%s2009_s0 + $0x60] sm:$0xff]  ;;  %v22_v23 = vld [vmem:[%s2009_s0 + $0x70] sm:$0xff]  ;;  %v46_v24 = vmax.f32 %v1101_v7, %v1136_v19  ;;  %v1152_v25 = vsel %vm40_vm0, %v18_v16, -inf  ;;  %v1155_v26 = vsel %vm40_vm0, %v15_v10, -inf  ;;  %v1158_v27 = vsel %vm40_vm0, %v17_v15, -inf  ;;  %v21_v28 = vld [vmem:[%s2009_s0 + $0x68] sm:$0xff] }
   0x6   :  { %v23_v29 = vld [vmem:[%s2009_s0 + $0x78] sm:$0xff]  ;;  %v24_v30 = vld [vmem:[%s2009_s0 + $0x80] sm:$0xff]  ;;  %v48_v31 = vmax.f32 %v44_v18, %v1139_v20  ;;  %v1171_v32 = vsel %vm40_vm0, %v20_v22, -inf  ;;  %v1174_v33 = vsel %vm40_vm0, %v22_v23, -inf  ;;  %v77_v34 = vmax.f32 %v1119_v13, %v1155_v26  ;;  %v26_v35 = vld [vmem:[%s2009_s0 + $0x90] sm:$0xff] }
   0x7   :  { %v28_v36 = vld [vmem:[%s2009_s0 + $0xa0] sm:$0xff]  ;;  %v50_v37 = vmax.f32 %v46_v24, %v1152_v25  ;;  %v1186_v38 = vsel %vm40_vm0, %v24_v30, -inf  ;;  %v79_v39 = vmax.f32 %v75_v21, %v1158_v27  ;;  %v1190_v40 = vsel %vm40_vm0, %v19_v17, -inf  ;;  %v25_v41 = vld [vmem:[%s2009_s0 + $0x88] sm:$0xff]  ;;  %v30_v42 = vld [vmem:[%s2009_s0 + $0xb0] sm:$0xff] }
   0x8   :  { %v52_v43 = vmax.f32 %v48_v31, %v1171_v32  ;;  %v1200_v44 = vsel %vm40_vm0, %v26_v35, -inf  ;;  %v1203_v45 = vsel %vm40_vm0, %v28_v36, -inf  ;;  %v81_v46 = vmax.f32 %v77_v34, %v1190_v40  ;;  %v27_v47 = vld [vmem:[%s2009_s0 + $0x98] sm:$0xff]  ;;  %v32_v48 = vld [vmem:[%s2009_s0 + $0xc0] sm:$0xff]  ;;  %v34_v49 = vld [vmem:[%s2009_s0 + $0xd0] sm:$0xff] }
   0x9   :  { %v54_v50 = vmax.f32 %v50_v37, %v1174_v33  ;;  %v1217_v51 = vsel %vm40_vm0, %v30_v42, -inf  ;;  %v82_v52 = vsel %vm40_vm0, %v21_v28, -inf  ;;  %v84_v53 = vsel %vm40_vm0, %v23_v29, -inf  ;;  %v29_v54 = vld [vmem:[%s2009_s0 + $0xa8] sm:$0xff]  ;;  %v31_v55 = vld [vmem:[%s2009_s0 + $0xb8] sm:$0xff]  ;;  %v36_v56 = vld [vmem:[%s2009_s0 + $0xe0] sm:$0xff] }
   0xa   :  { %v56_v57 = vmax.f32 %v52_v43, %v1186_v38  ;;  %v63_v58 = vsel %vm40_vm0, %v32_v48, -inf  ;;  %v65_v59 = vsel %vm40_vm0, %v34_v49, -inf  ;;  %v83_v60 = vmax.f32 %v79_v39, %v82_v52  ;;  %v33_v61 = vld [vmem:[%s2009_s0 + $0xc8] sm:$0xff]  ;;  %v35_v62 = vld [vmem:[%s2009_s0 + $0xd8] sm:$0xff]  ;;  %v38_v63 = vld [vmem:[%s2009_s0 + $0xf0] sm:$0xff] }
   0xb   :  { %v58_v0 = vmax.f32 %v54_v50, %v1200_v44  ;;  %v67_v1 = vsel %vm40_vm0, %v36_v56, -inf  ;;  %v85_v2 = vmax.f32 %v81_v46, %v84_v53  ;;  %v1245_v3 = vsel %vm40_vm0, %v25_v41, -inf  ;;  %v37_v4 = vld [vmem:[%s2009_s0 + $0xe8] sm:$0xff]  ;;  %v39_v5 = vld [vmem:[%s2009_s0 + $0xf8] sm:$0xff] }
   0xc   :  { %v60_v9 = vmax.f32 %v56_v57, %v1203_v45  ;;  %v69_v10 = vsel %vm40_vm0, %v38_v63, -inf  ;;  %v87_v11 = vmax.f32 %v83_v60, %v1245_v3  ;;  %v88_v15 = vsel %vm40_vm0, %v27_v47, -inf  ;;  %v241_v60 = vld [vmem:[%s2009_s0 + $0x20] sm:$0x1f] }
   0xd   :  { %v62_v16 = vmax.f32 %v58_v0, %v1217_v51  ;;  %v89_v17 = vmax.f32 %v85_v2, %v88_v15  ;;  %v1259_v18 = vsel %vm40_vm0, %v29_v54, -inf  ;;  %v1262_v21 = vsel %vm40_vm0, %v31_v55, -inf  ;;  %v243_v0 = vld [vmem:[%s2009_s0 + $0x40] sm:$0x1f] }
   0xe   :  { %v64_v22 = vmax.f32 %v60_v9, %v63_v58  ;;  %v91_v23 = vmax.f32 %v87_v11, %v1259_v18  ;;  %v94_v24 = vsel %vm40_vm0, %v33_v61, -inf  ;;  %v96_v28 = vsel %vm40_vm0, %v35_v62, -inf  ;;  %v242_v61 = vld [vmem:[%s2009_s0 + $0x30] sm:$0x1f] }
   0xf   :  { %v66_v29 = vmax.f32 %v62_v16, %v65_v59  ;;  %v93_v30 = vmax.f32 %v89_v17, %v1262_v21  ;;  %v98_v31 = vsel %vm40_vm0, %v37_v4, -inf  ;;  %v100_v34 = vsel %vm40_vm0, %v39_v5, -inf  ;;  %v262_v17 = vld [vmem:[%s2009_s0 + $0x5] sm:$0x3f] }
  0x10   :  { %v68_v35 = vmax.f32 %v64_v22, %v67_v1  ;;  %v95_v36 = vmax.f32 %v91_v23, %v94_v24  ;;  %v127_v37 = vmax.f32 %v1098_v6, %v1139_v20  ;;  %v129_v39 = vmax.f32 %v1101_v7, %v1152_v25 }
  0x11   :  { %v70_v41 = vmax.f32 %v66_v29, %v69_v10  ;;  %v97_v42 = vmax.f32 %v93_v30, %v96_v28  ;;  %v131_v43 = vmax.f32 %v1116_v12, %v1171_v32  ;;  %v133_v46 = vmax.f32 %v1136_v19, %v1174_v33 }
  0x12   :  { %v99_v47 = vmax.f32 %v95_v36, %v98_v31  ;;  %v134_v48 = vmax.f32 %v127_v37, %v129_v39  ;;  %v158_v49 = vmax.f32 %v1104_v8, %v1158_v27  ;;  %v160_v50 = vmax.f32 %v1119_v13, %v1190_v40  ;;  %v264_v37 = vld [vmem:[%s2009_s0 + $0x25] sm:$0x3f] }
  0x13   :  { %v71_v6 = vmax.f32 %v68_v35, %v70_v41  ;;  %v101_v20 = vmax.f32 %v97_v42, %v100_v34  ;;  %v135_v54 = vmax.f32 %v131_v43, %v133_v46  ;;  %v162_v7 = vmax.f32 %v1122_v14, %v82_v52 }
  0x14   :  { %v164_v25 = vmax.f32 %v1155_v26, %v84_v53  ;;  %v165_v12 = vmax.f32 %v158_v49, %v160_v50  ;;  %v190_v32 = vmax.f32 %v1186_v38, %v63_v58  ;;  %v192_v19 = vmax.f32 %v1200_v44, %v65_v59  ;;  %v239_v26 = vld [vmem:[%s2009_s0] sm:$0x1f]  ;;  %v240_v38 = vld [vmem:[%s2009_s0 + $0x10] sm:$0x1f] }
  0x15   :  { %v102_v33 = vmax.f32 %v99_v47, %v101_v20  ;;  %v103_v55 = vsel %vm40_vm0, %v71_v6, -inf  ;;  %v136_v8 = vmax.f32 %v134_v48, %v135_v54  ;;  %v194_v27 = vmax.f32 %v1203_v45, %v67_v1  ;;  %v265_v47 = vld [vmem:[%s2009_s0 + $0x35] sm:$0x3f]  ;;  %v266_v6 = vld [vmem:[%s2009_s0 + $0x45] sm:$0x3f] }
  0x16   :  { %v166_v13 = vmax.f32 %v162_v7, %v164_v25  ;;  %v196_v40 = vmax.f32 %v1217_v51, %v69_v10  ;;  %v197_v56 = vmax.f32 %v190_v32, %v192_v19  ;;  %v221_v14 = vmax.f32 %v1245_v3, %v94_v24 }
  0x17   :  { %v104_v44 = vsel %vm40_vm0, %v102_v33, -inf  ;;  %v137_v52 = vsel %vm40_vm0, %v136_v8, -inf  ;;  %v223_v53 = vmax.f32 %v88_v15, %v96_v28  ;;  %v225_v45 = vmax.f32 %v1259_v18, %v98_v31  ;;  %v263_v31 = vld [vmem:[%s2009_s0 + $0x15] sm:$0x3f]  ;;  %v285_v8 = vld [vmem:[%s2009_s0 + $0xb] sm:$0x1f] }
  0x18   :  { %v105_v57 = vmax.f32 %v103_v55, %v104_v44  ;;  %v138_v51 = vrot.slane %v137_v52, 4  ;;  %v167_v58 = vmax.f32 %v165_v12, %v166_v13  ;;  %v198_v59 = vmax.f32 %v194_v27, %v196_v40  ;;  %v286_v27 = vld [vmem:[%s2009_s0 + $0x1b] sm:$0x1f] }
  0x19   :  { %v227_v62 = vmax.f32 %v1262_v21, %v100_v34  ;;  %v228_v63 = vmax.f32 %v221_v14, %v223_v53  ;;  %v245_v1 = vsel %vm244_vm1, %v239_v26, -inf  ;;  %v246_v2 = vsel %vm244_vm1, %v240_v38, -inf  ;;  %v287_v26 = vld [vmem:[%s2009_s0 + $0x2b] sm:$0x1f] }
  0x1a   :  { %v106_v3 = vrot.slane %v105_v57, 4  ;;  %v139_v4 = vmax.f32 %v137_v52, %v138_v51  ;;  %v168_v5 = vsel %vm40_vm0, %v167_v58, -inf  ;;  %v199_v9 = vmax.f32 %v197_v56, %v198_v59 }
  0x1b   :  { %v169_v10 = vrot.slane %v168_v5, 4  ;;  %v229_v11 = vmax.f32 %v225_v45, %v227_v62  ;;  %v247_v15 = vsel %vm244_vm1, %v241_v60, -inf  ;;  %v248_v16 = vsel %vm244_vm1, %v242_v61, -inf  ;;  %v288_v45 = vld [vmem:[%s2009_s0 + $0x3b] sm:$0x1f] }
  0x1c   :  { %v107_v18 = vmax.f32 %v105_v57, %v106_v3  ;;  %v140_v21 = vrot.slane %v139_v4, 2  ;;  %v200_v22 = vsel %vm40_vm0, %v199_v9, -inf  ;;  %v249_v23 = vsel %vm244_vm1, %v243_v0, -inf  ;;  %v289_v57 = vld [vmem:[%s2009_s0 + $0x4b] sm:$0x1f] }
  0x1d   :  { %v170_v24 = vmax.f32 %v168_v5, %v169_v10  ;;  %v201_v28 = vrot.slane %v200_v22, 4  ;;  %v230_v29 = vmax.f32 %v228_v63, %v229_v11  ;;  %v250_v30 = vmax.f32 %v245_v1, %v249_v23  ;;  %v910_v61 = vld [vmem:[%s2009_s0 + $0x50] sm:$0x1f]  ;;  %v913_v11 = vld [vmem:[%s2009_s0 + $0x80] sm:$0x1f] }
  0x1e   :  { %v108_v34 = vrot.slane %v107_v18, 2  ;;  %v141_v35 = vmax.f32 %v139_v4, %v140_v21  ;;  %v252_v36 = vmax.f32 %v247_v15, %v248_v16  ;;  %v268_v39 = vsel %vm267_vm2, %v262_v17, -inf  ;;  %v912_v3 = vld [vmem:[%s2009_s0 + $0x70] sm:$0x1f] }
  0x1f   :  { %v171_v41 = vrot.slane %v170_v24, 2  ;;  %v202_v42 = vmax.f32 %v200_v22, %v201_v28  ;;  %v231_v43 = vsel %vm40_vm0, %v230_v29, -inf  ;;  %v251_v46 = vmax.f32 %v250_v30, %v246_v2  ;;  %v911_v2 = vld [vmem:[%s2009_s0 + $0x60] sm:$0x1f]  ;;  %v914_v21 = vld [vmem:[%s2009_s0 + $0x90] sm:$0x1f] }
  0x20   :  { %v109_v48 = vmax.f32 %v107_v18, %v108_v34  ;;  %v142_v49 = vrot.slane %v141_v35, 1  ;;  %v232_v50 = vrot.slane %v231_v43, 4  ;;  %v269_v20 = vsel %vm267_vm2, %v263_v31, -inf  ;;  %v915_v22 = vld [vmem:[%s2009_s0 + $0xa0] sm:$0x1f] }
  0x21   :  { %v172_v54 = vmax.f32 %v170_v24, %v171_v41  ;;  %v203_v7 = vrot.slane %v202_v42, 2  ;;  %v253_v25 = vmax.f32 %v251_v46, %v252_v36  ;;  %v270_v12 = vsel %vm267_vm2, %v264_v37, -inf  ;;  %v916_v36 = vld [vmem:[%s2009_s0 + $0x55] sm:$0x3f]  ;;  %v917_v37 = vld [vmem:[%s2009_s0 + $0x65] sm:$0x3f] }
  0x22   :  { %v110_v32 = vrot.slane %v109_v48, 1  ;;  %v143_v19 = vmax.f32 %v141_v35, %v142_v49  ;;  %v233_v33 = vmax.f32 %v231_v43, %v232_v50  ;;  %v271_v55 = vsel %vm267_vm2, %v265_v47, -inf  ;;  %v918_v46 = vld [vmem:[%s2009_s0 + $0x75] sm:$0x3f] }
  0x23   :  { %v173_v13 = vrot.slane %v172_v54, 1  ;;  %v204_v40 = vmax.f32 %v202_v42, %v203_v7  ;;  %v254_v56 = vsel %vm244_vm1, %v253_v25, -inf  ;;  %v272_v14 = vsel %vm267_vm2, %v266_v6, -inf  ;;  %v919_v6 = vld [vmem:[%s2009_s0 + $0x85] sm:$0x3f] }
  0x24   :  { %v111_v38 = vmax.f32 %v109_v48, %v110_v32  ;;  %144 = vst.msk [vmem:[%s2010_s1 + $0x1] sm:$0x1] %vm112_vm3, %v143_v19  ;;  %v234_v44 = vrot.slane %v233_v33, 2  ;;  %v255_v52 = vrot.slane %v254_v56, 4  ;;  %v273_v53 = vmax.f32 %v268_v39, %v272_v14  ;;  %v921_v25 = vld [vmem:[%s2009_s0 + $0xa5] sm:$0x3f] }
  0x25   :  { %v174_v51 = vmax.f32 %v172_v54, %v173_v13  ;;  %v205_v58 = vrot.slane %v204_v40, 1  ;;  %v275_v59 = vmax.f32 %v270_v12, %v271_v55  ;;  %v290_v60 = vsel %vm244_vm1, %v285_v8, -inf  ;;  %v922_v19 = vld [vmem:[%s2009_s0 + $0x5b] sm:$0x1f]  ;;  %v923_v13 = vld [vmem:[%s2009_s0 + $0x6b] sm:$0x1f] }
  0x26   :  { %113 = vst.msk [vmem:[%s2010_s1] sm:$0x1] %vm112_vm3, %v111_v38  ;;  %v235_v62 = vmax.f32 %v233_v33, %v234_v44  ;;  %v256_v63 = vmax.f32 %v254_v56, %v255_v52  ;;  %v274_v0 = vmax.f32 %v273_v53, %v269_v20  ;;  %v291_v1 = vsel %vm244_vm1, %v286_v27, -inf  ;;  %v920_v20 = vld [vmem:[%s2009_s0 + $0x95] sm:$0x3f] }
  0x27   :  { %175 = vst.msk [vmem:[%s2010_s1 + $0x2] sm:$0x1] %vm112_vm3, %v174_v51  ;;  %v206_v4 = vmax.f32 %v204_v40, %v205_v58  ;;  %v292_v5 = vsel %vm244_vm1, %v287_v26, -inf  ;;  %v293_v9 = vsel %vm244_vm1, %v288_v45, -inf  ;;  %v294_v10 = vsel %vm244_vm1, %v289_v57, -inf }
  0x28   :  { %v236_v15 = vrot.slane %v235_v62, 1  ;;  %v257_v16 = vrot.slane %v256_v63, 2  ;;  %v276_v17 = vmax.f32 %v274_v0, %v275_v59  ;;  %v295_v18 = vmax.f32 %v290_v60, %v294_v10  ;;  %v924_v40 = vld [vmem:[%s2009_s0 + $0x7b] sm:$0x1f]  ;;  %v925_v44 = vld [vmem:[%s2009_s0 + $0x8b] sm:$0x1f] }
  0x29   :  { %207 = vst.msk [vmem:[%s2010_s1 + $0x3] sm:$0x1] %vm112_vm3, %v206_v4  ;;  %v297_v23 = vmax.f32 %v292_v5, %v293_v9  ;;  %v314_v24 = vsel %vm244_vm1, %v910_v61, -inf  ;;  %v315_v28 = vsel %vm244_vm1, %v911_v2, -inf  ;;  %v316_v29 = vsel %vm244_vm1, %v912_v3, -inf }
  0x2a   :  { %v237_v30 = vmax.f32 %v235_v62, %v236_v15  ;;  %v258_v31 = vmax.f32 %v256_v63, %v257_v16  ;;  %v277_v34 = vsel %vm267_vm2, %v276_v17, -inf  ;;  %v296_v35 = vmax.f32 %v295_v18, %v291_v1  ;;  %v926_v51 = vld [vmem:[%s2009_s0 + $0x9b] sm:$0x1f]  ;;  %v927_v61 = vld [vmem:[%s2009_s0 + $0xab] sm:$0x1f] }
  0x2b   :  { %v278_v39 = vrot.slane %v277_v34, 4  ;;  %v317_v41 = vsel %vm244_vm1, %v913_v11, -inf  ;;  %v318_v42 = vsel %vm244_vm1, %v914_v21, -inf  ;;  %v320_v43 = vsel %vm244_vm1, %v915_v22, -inf  ;;  %v928_v63 = vld [vmem:[%s2009_s0 + $0xb0] sm:$0x1f] }
  0x2c   :  { %238 = vst.msk [vmem:[%s2010_s1 + $0x4] sm:$0x1] %vm112_vm3, %v237_v30  ;;  %v259_v47 = vrot.slane %v258_v31, 1  ;;  %v298_v48 = vmax.f32 %v296_v35, %v297_v23  ;;  %v319_v49 = vmax.f32 %v314_v24, %v318_v42  ;;  %v321_v50 = vmax.f32 %v315_v28, %v320_v43  ;;  %v929_v4 = vld [vmem:[%s2009_s0 + $0xc0] sm:$0x1f] }
  0x2d   :  { %v279_v54 = vmax.f32 %v277_v34, %v278_v39  ;;  %v323_v7 = vmax.f32 %v316_v29, %v317_v41  ;;  %v339_v12 = vsel %vm267_vm2, %v916_v36, -inf  ;;  %v340_v32 = vsel %vm267_vm2, %v917_v37, -inf  ;;  %v930_v15 = vld [vmem:[%s2009_s0 + $0xd0] sm:$0x1f]  ;;  %v931_v21 = vld [vmem:[%s2009_s0 + $0xe0] sm:$0x1f] }
  0x2e   :  { %v260_v33 = vmax.f32 %v258_v31, %v259_v47  ;;  %v299_v55 = vsel %vm244_vm1, %v298_v48, -inf  ;;  %v322_v8 = vmax.f32 %v319_v49, %v321_v50  ;;  %v341_v27 = vsel %vm267_vm2, %v918_v46, -inf  ;;  %v932_v30 = vld [vmem:[%s2009_s0 + $0xf0] sm:$0x1f]  ;;  %v933_v37 = vld [vmem:[%s2009_s0 + $0xb5] sm:$0x3f] }
  0x2f   :  { %v280_v56 = vrot.slane %v279_v54, 2  ;;  %v300_v14 = vrot.slane %v299_v55, 4  ;;  %v342_v26 = vsel %vm267_vm2, %v919_v6, -inf  ;;  %v343_v38 = vsel %vm267_vm2, %v920_v20, -inf  ;;  %v934_v39 = vld [vmem:[%s2009_s0 + $0xc5] sm:$0x3f] }
  0x30   :  { %261 = vst.msk [vmem:[%s2010_s1 + $0x5] sm:$0x1] %vm112_vm3, %v260_v33  ;;  %v324_v52 = vmax.f32 %v322_v8, %v323_v7  ;;  %v344_v53 = vmax.f32 %v339_v12, %v343_v38  ;;  %v345_v45 = vsel %vm267_vm2, %v921_v25, -inf  ;;  %v348_v57 = vmax.f32 %v341_v27, %v342_v26  ;;  %v935_v47 = vld [vmem:[%s2009_s0 + $0xd5] sm:$0x3f] }
  0x31   :  { %v281_v58 = vmax.f32 %v279_v54, %v280_v56  ;;  %v301_v59 = vmax.f32 %v299_v55, %v300_v14  ;;  %v346_v60 = vmax.f32 %v340_v32, %v345_v45  ;;  %v364_v62 = vsel %vm244_vm1, %v922_v19, -inf  ;;  %v936_v20 = vld [vmem:[%s2009_s0 + $0xe5] sm:$0x3f]  ;;  %v937_v54 = vld [vmem:[%s2009_s0 + $0xf5] sm:$0x3f] }
  0x32   :  { %v325_v0 = vsel %vm244_vm1, %v324_v52, -inf  ;;  %v365_v1 = vsel %vm244_vm1, %v923_v13, -inf  ;;  %v366_v2 = vsel %vm244_vm1, %v924_v40, -inf  ;;  %v367_v3 = vsel %vm244_vm1, %v925_v44, -inf  ;;  %v938_v27 = vld [vmem:[%s2009_s0 + $0xbb] sm:$0x1f] }
  0x33   :  { %v282_v5 = vrot.slane %v281_v58, 1  ;;  %v302_v9 = vrot.slane %v301_v59, 2  ;;  %v326_v10 = vrot.slane %v325_v0, 4  ;;  %v347_v11 = vmax.f32 %v344_v53, %v346_v60  ;;  %v939_v13 = vld [vmem:[%s2009_s0 + $0xcb] sm:$0x1f] }
  0x34   :  { %v368_v16 = vsel %vm244_vm1, %v926_v51, -inf  ;;  %v370_v17 = vsel %vm244_vm1, %v927_v61, -inf  ;;  %v373_v18 = vmax.f32 %v366_v2, %v367_v3  ;;  %v389_v22 = vsel %vm244_vm1, %v928_v63, -inf  ;;  %v940_v38 = vld [vmem:[%s2009_s0 + $0xdb] sm:$0x1f]  ;;  %v943_v2 = vld [vmem:[%s2009_s0 + $0x100] sm:$0xff] }
  0x35   :  { %v283_v23 = vmax.f32 %v281_v58, %v282_v5  ;;  %v303_v24 = vmax.f32 %v301_v59, %v302_v9  ;;  %v327_v28 = vmax.f32 %v325_v0, %v326_v10  ;;  %v349_v29 = vmax.f32 %v347_v11, %v348_v57  ;;  %v941_v57 = vld [vmem:[%s2009_s0 + $0xeb] sm:$0x1f]  ;;  %v942_v51 = vld [vmem:[%s2009_s0 + $0xfb] sm:$0x1f]  ;;  %v945_v3 = vld [vmem:[%s2009_s0 + $0x110] sm:$0xff] }
  0x36   :  { %v369_v31 = vmax.f32 %v364_v62, %v368_v16  ;;  %v371_v34 = vmax.f32 %v365_v1, %v370_v17  ;;  %v390_v35 = vsel %vm244_vm1, %v929_v4, -inf  ;;  %v391_v36 = vsel %vm244_vm1, %v930_v15, -inf }
  0x37   :  { %284 = vst.msk [vmem:[%s2010_s1 + $0x6] sm:$0x1] %vm112_vm3, %v283_v23  ;;  %v304_v41 = vrot.slane %v303_v24, 1  ;;  %v328_v42 = vrot.slane %v327_v28, 2  ;;  %v350_v43 = vsel %vm267_vm2, %v349_v29, -inf  ;;  %v392_v46 = vsel %vm244_vm1, %v931_v21, -inf }
  0x38   :  { %v351_v48 = vrot.slane %v350_v43, 4  ;;  %v372_v49 = vmax.f32 %v369_v31, %v371_v34  ;;  %v393_v50 = vsel %vm244_vm1, %v932_v30, -inf  ;;  %v396_v6 = vmax.f32 %v391_v36, %v392_v46  ;;  %v949_v21 = vld [vmem:[%s2009_s0 + $0x130] sm:$0xff] }
  0x39   :  { %v305_v7 = vmax.f32 %v303_v24, %v304_v41  ;;  %v329_v25 = vmax.f32 %v327_v28, %v328_v42  ;;  %v394_v12 = vmax.f32 %v389_v22, %v393_v50  ;;  %v411_v32 = vsel %vm267_vm2, %v933_v37, -inf  ;;  %v953_v36 = vld [vmem:[%s2009_s0 + $0x150] sm:$0xff] }
  0x3a   :  { %v352_v19 = vmax.f32 %v350_v43, %v351_v48  ;;  %v374_v33 = vmax.f32 %v372_v49, %v373_v18  ;;  %v412_v55 = vsel %vm267_vm2, %v934_v39, -inf  ;;  %v413_v8 = vsel %vm267_vm2, %v935_v47, -inf  ;;  %v947_v18 = vld [vmem:[%s2009_s0 + $0x120] sm:$0xff] }
  0x3b   :  { %306 = vst.msk [vmem:[%s2010_s1 + $0x7] sm:$0x1] %vm112_vm3, %v305_v7  ;;  %v330_v40 = vrot.slane %v329_v25, 1  ;;  %v395_v56 = vmax.f32 %v394_v12, %v390_v35  ;;  %v414_v14 = vsel %vm267_vm2, %v936_v20, -inf  ;;  %v415_v26 = vsel %vm267_vm2, %v937_v54, -inf  ;;  %v951_v35 = vld [vmem:[%s2009_s0 + $0x140] sm:$0xff] }
  0x3c   :  { %v353_v44 = vrot.slane %v352_v19, 2  ;;  %v375_v52 = vsel %vm244_vm1, %v374_v33, -inf  ;;  %v416_v53 = vmax.f32 %v411_v32, %v415_v26  ;;  %v418_v45 = vmax.f32 %v413_v8, %v414_v14  ;;  %v955_v47 = vld [vmem:[%s2009_s0 + $0x160] sm:$0xff]  ;;  %v957_v20 = vld [vmem:[%s2009_s0 + $0x170] sm:$0xff] }
  0x3d   :  { %v331_v58 = vmax.f32 %v329_v25, %v330_v40  ;;  %v376_v59 = vrot.slane %v375_v52, 4  ;;  %v397_v60 = vmax.f32 %v395_v56, %v396_v6  ;;  %v433_v61 = vsel %vm244_vm1, %v938_v27, -inf  ;;  %v959_v54 = vld [vmem:[%s2009_s0 + $0x180] sm:$0xff]  ;;  %v965_v56 = vld [vmem:[%s2009_s0 + $0x1b0] sm:$0xff] }
  0x3e   :  { %v354_v62 = vmax.f32 %v352_v19, %v353_v44  ;;  %v417_v63 = vmax.f32 %v416_v53, %v412_v55  ;;  %v434_v0 = vsel %vm244_vm1, %v939_v13, -inf  ;;  %v435_v1 = vsel %vm244_vm1, %v940_v38, -inf  ;;  %v961_v19 = vld [vmem:[%s2009_s0 + $0x190] sm:$0xff]  ;;  %v963_v40 = vld [vmem:[%s2009_s0 + $0x1a0] sm:$0xff] }
  0x3f   :  { %332 = vst.msk [vmem:[%s2010_s1 + $0x8] sm:$0x1] %vm112_vm3, %v331_v58  ;;  %v377_v4 = vmax.f32 %v375_v52, %v376_v59  ;;  %v398_v5 = vsel %vm244_vm1, %v397_v60, -inf  ;;  %v436_v9 = vsel %vm244_vm1, %v941_v57, -inf  ;;  %v437_v10 = vsel %vm244_vm1, %v942_v51, -inf  ;;  %v967_v38 = vld [vmem:[%s2009_s0 + $0x1c0] sm:$0xff] }
  0x40   :  { %v355_v11 = vrot.slane %v354_v62, 1  ;;  %v399_v15 = vrot.slane %v398_v5, 4  ;;  %v419_v16 = vmax.f32 %v417_v63, %v418_v45  ;;  %v438_v17 = vmax.f32 %v433_v61, %v437_v10  ;;  %v969_v51 = vld [vmem:[%s2009_s0 + $0x1d0] sm:$0xff]  ;;  %v971_v58 = vld [vmem:[%s2009_s0 + $0x1e0] sm:$0xff]  ;;  %v944_v63 = vld [vmem:[%s2009_s0 + $0x108] sm:$0xff] }
  0x41   :  { %v378_v22 = vrot.slane %v377_v4, 2  ;;  %v440_v23 = vmax.f32 %v435_v1, %v436_v9  ;;  %v1545_v24 = vsel %vm40_vm0, %v943_v2, -inf  ;;  %v1548_v28 = vsel %vm40_vm0, %v945_v3, -inf  ;;  %v973_v59 = vld [vmem:[%s2009_s0 + $0x1f0] sm:$0xff]  ;;  %v948_v9 = vld [vmem:[%s2009_s0 + $0x128] sm:$0xff]  ;;  %v950_v10 = vld [vmem:[%s2009_s0 + $0x138] sm:$0xff] }
  0x42   :  { %v356_v29 = vmax.f32 %v354_v62, %v355_v11  ;;  %v400_v30 = vmax.f32 %v398_v5, %v399_v15  ;;  %v420_v31 = vsel %vm267_vm2, %v419_v16, -inf  ;;  %v439_v34 = vmax.f32 %v438_v17, %v434_v0  ;;  %v946_v5 = vld [vmem:[%s2009_s0 + $0x118] sm:$0xff] }
  0x43   :  { %v379_v37 = vmax.f32 %v377_v4, %v378_v22  ;;  %v421_v39 = vrot.slane %v420_v31, 4  ;;  %v1558_v41 = vsel %vm40_vm0, %v947_v18, -inf  ;;  %v1561_v42 = vsel %vm40_vm0, %v949_v21, -inf }
  0x44   :  { %357 = vst.msk [vmem:[%s2010_s1 + $0x9] sm:$0x1] %vm112_vm3, %v356_v29  ;;  %v401_v43 = vrot.slane %v400_v30, 2  ;;  %v441_v46 = vmax.f32 %v439_v34, %v440_v23  ;;  %v486_v48 = vmax.f32 %v1545_v24, %v1558_v41  ;;  %v488_v49 = vmax.f32 %v1548_v28, %v1561_v42  ;;  %v952_v29 = vld [vmem:[%s2009_s0 + $0x148] sm:$0xff] }
  0x45   :  { %v380_v50 = vrot.slane %v379_v37, 1  ;;  %v422_v6 = vmax.f32 %v420_v31, %v421_v39  ;;  %v1581_v7 = vsel %vm40_vm0, %v951_v35, -inf  ;;  %v1584_v25 = vsel %vm40_vm0, %v953_v36, -inf  ;;  %v956_v31 = vld [vmem:[%s2009_s0 + $0x168] sm:$0xff]  ;;  %v958_v36 = vld [vmem:[%s2009_s0 + $0x178] sm:$0xff] }
  0x46   :  { %v402_v12 = vmax.f32 %v400_v30, %v401_v43  ;;  %v442_v32 = vsel %vm244_vm1, %v441_v46, -inf  ;;  %v490_v33 = vmax.f32 %v486_v48, %v1581_v7  ;;  %v492_v55 = vmax.f32 %v488_v49, %v1584_v25  ;;  %v954_v30 = vld [vmem:[%s2009_s0 + $0x158] sm:$0xff]  ;;  %v960_v48 = vld [vmem:[%s2009_s0 + $0x188] sm:$0xff] }
  0x47   :  { %v381_v8 = vmax.f32 %v379_v37, %v380_v50  ;;  %v423_v27 = vrot.slane %v422_v6, 2  ;;  %v443_v13 = vrot.slane %v442_v32, 4  ;;  %v1599_v14 = vsel %vm40_vm0, %v955_v47, -inf  ;;  %v962_v49 = vld [vmem:[%s2009_s0 + $0x198] sm:$0xff]  ;;  %v964_v50 = vld [vmem:[%s2009_s0 + $0x1a8] sm:$0xff] }
  0x48   :  { %v403_v26 = vrot.slane %v402_v12, 1  ;;  %v494_v44 = vmax.f32 %v490_v33, %v1599_v14  ;;  %v1606_v52 = vsel %vm40_vm0, %v957_v20, -inf  ;;  %v1609_v53 = vsel %vm40_vm0, %v959_v54, -inf }
  0x49   :  { %382 = vst.msk [vmem:[%s2010_s1 + $0xa] sm:$0x1] %vm112_vm3, %v381_v8  ;;  %v424_v45 = vmax.f32 %v422_v6, %v423_v27  ;;  %v444_v57 = vmax.f32 %v442_v32, %v443_v13  ;;  %v496_v60 = vmax.f32 %v492_v55, %v1606_v52  ;;  %v1626_v61 = vsel %vm40_vm0, %v961_v19, -inf  ;;  %v968_v32 = vld [vmem:[%s2009_s0 + $0x1c8] sm:$0xff]  ;;  %v970_v13 = vld [vmem:[%s2009_s0 + $0x1d8] sm:$0xff] }
  0x4a   :  { %v404_v62 = vmax.f32 %v402_v12, %v403_v26  ;;  %v498_v0 = vmax.f32 %v494_v44, %v1609_v53  ;;  %v1633_v1 = vsel %vm40_vm0, %v963_v40, -inf  ;;  %v1636_v2 = vsel %vm40_vm0, %v965_v56, -inf  ;;  %v966_v12 = vld [vmem:[%s2009_s0 + $0x1b8] sm:$0xff]  ;;  %v972_v40 = vld [vmem:[%s2009_s0 + $0x1e8] sm:$0xff] }
  0x4b   :  { %v425_v3 = vrot.slane %v424_v45, 1  ;;  %v445_v4 = vrot.slane %v444_v57, 2  ;;  %v500_v11 = vmax.f32 %v496_v60, %v1626_v61  ;;  %v1649_v15 = vsel %vm40_vm0, %v967_v38, -inf  ;;  %v974_v56 = vld [vmem:[%s2009_s0 + $0x1f8] sm:$0xff] }
  0x4c   :  { %405 = vst.msk [vmem:[%s2010_s1 + $0xb] sm:$0x1] %vm112_vm3, %v404_v62  ;;  %v502_v16 = vmax.f32 %v498_v0, %v1633_v1  ;;  %v1657_v17 = vsel %vm40_vm0, %v969_v51, -inf  ;;  %v1660_v18 = vsel %vm40_vm0, %v971_v58, -inf  ;;  %v1663_v21 = vsel %vm40_vm0, %v973_v59, -inf }
  0x4d   :  { %v426_v22 = vmax.f32 %v424_v45, %v425_v3  ;;  %v446_v23 = vmax.f32 %v444_v57, %v445_v4  ;;  %v504_v34 = vmax.f32 %v500_v11, %v1636_v2  ;;  %v514_v35 = vsel %vm40_vm0, %v944_v63, -inf }
  0x4e   :  { %v506_v37 = vmax.f32 %v502_v16, %v1649_v15  ;;  %v515_v39 = vsel %vm40_vm0, %v946_v5, -inf  ;;  %v516_v43 = vsel %vm40_vm0, %v948_v9, -inf  ;;  %v518_v46 = vsel %vm40_vm0, %v950_v10, -inf }
  0x4f   :  { %427 = vst.msk [vmem:[%s2010_s1 + $0xc] sm:$0x1] %vm112_vm3, %v426_v22  ;;  %v447_v47 = vrot.slane %v446_v23, 1  ;;  %v508_v6 = vmax.f32 %v504_v34, %v1657_v17  ;;  %v517_v20 = vmax.f32 %v514_v35, %v516_v43  ;;  %v519_v54 = vmax.f32 %v515_v39, %v518_v46 }
  0x50   :  { %v510_v19 = vmax.f32 %v506_v37, %v1660_v18  ;;  %v520_v33 = vsel %vm40_vm0, %v952_v29, -inf  ;;  %v522_v55 = vsel %vm40_vm0, %v954_v30, -inf  ;;  %v524_v8 = vsel %vm40_vm0, %v956_v31, -inf }
  0x51   :  { %v448_v27 = vmax.f32 %v446_v23, %v447_v47  ;;  %v512_v26 = vmax.f32 %v508_v6, %v1663_v21  ;;  %v521_v38 = vmax.f32 %v517_v20, %v520_v33  ;;  %v523_v44 = vmax.f32 %v519_v54, %v522_v55 }
  0x52   :  { %v526_v45 = vsel %vm40_vm0, %v958_v36, -inf  ;;  %v528_v57 = vsel %vm40_vm0, %v960_v48, -inf  ;;  %v530_v51 = vsel %vm40_vm0, %v962_v49, -inf  ;;  %v532_v58 = vsel %vm40_vm0, %v964_v50, -inf }
  0x53   :  { %449 = vst.msk [vmem:[%s2010_s1 + $0xd] sm:$0x1] %vm112_vm3, %v448_v27  ;;  %v513_v59 = vmax.f32 %v510_v19, %v512_v26  ;;  %v525_v60 = vmax.f32 %v521_v38, %v524_v8  ;;  %v527_v62 = vmax.f32 %v523_v44, %v526_v45  ;;  %v534_v63 = vsel %vm40_vm0, %v966_v12, -inf  ;;  %v1018_v26 = vld [vmem:[%s2009_s0 + $0x105] sm:$0x3f] }
  0x54   :  { %v536_v0 = vsel %vm40_vm0, %v968_v32, -inf  ;;  %v538_v3 = vsel %vm40_vm0, %v970_v13, -inf  ;;  %v540_v4 = vsel %vm40_vm0, %v972_v40, -inf  ;;  %v542_v5 = vsel %vm40_vm0, %v974_v56, -inf  ;;  %v1016_v56 = vld [vmem:[%s2009_s0 + $0x140] sm:$0x1f] }
  0x55   :  { %v529_v9 = vmax.f32 %v525_v60, %v528_v57  ;;  %v531_v10 = vmax.f32 %v527_v62, %v530_v51  ;;  %v545_v11 = vsel %vm40_vm0, %v513_v59, -inf  ;;  %v569_v16 = vmax.f32 %v1545_v24, %v1581_v7 }
  0x56   :  { %v571_v22 = vmax.f32 %v1548_v28, %v1584_v25  ;;  %v573_v23 = vmax.f32 %v1558_v41, %v1599_v14  ;;  %v575_v29 = vmax.f32 %v1561_v42, %v1606_v52  ;;  %v600_v30 = vmax.f32 %v514_v35, %v520_v33  ;;  %v1015_v33 = vld [vmem:[%s2009_s0 + $0x130] sm:$0x1f] }
  0x57   :  { %v533_v31 = vmax.f32 %v529_v9, %v532_v58  ;;  %v535_v34 = vmax.f32 %v531_v10, %v534_v63  ;;  %v602_v36 = vmax.f32 %v515_v39, %v522_v55  ;;  %v604_v37 = vmax.f32 %v516_v43, %v524_v8 }
  0x58   :  { %v576_v47 = vmax.f32 %v569_v16, %v571_v22  ;;  %v577_v48 = vmax.f32 %v573_v23, %v575_v29  ;;  %v606_v49 = vmax.f32 %v518_v46, %v526_v45  ;;  %v632_v24 = vmax.f32 %v1609_v53, %v1649_v15  ;;  %v1012_v53 = vld [vmem:[%s2009_s0 + $0x100] sm:$0x1f]  ;;  %v1020_v16 = vld [vmem:[%s2009_s0 + $0x125] sm:$0x3f] }
  0x59   :  { %v537_v7 = vmax.f32 %v533_v31, %v536_v0  ;;  %v539_v50 = vmax.f32 %v535_v34, %v538_v3  ;;  %v607_v28 = vmax.f32 %v600_v30, %v602_v36  ;;  %v634_v41 = vmax.f32 %v1626_v61, %v1657_v17  ;;  %v1021_v31 = vld [vmem:[%s2009_s0 + $0x135] sm:$0x3f] }
  0x5a   :  { %v578_v25 = vmax.f32 %v576_v47, %v577_v48  ;;  %v608_v14 = vmax.f32 %v604_v37, %v606_v49  ;;  %v636_v42 = vmax.f32 %v1633_v1, %v1660_v18  ;;  %v638_v52 = vmax.f32 %v1636_v2, %v1663_v21  ;;  %v1013_v2 = vld [vmem:[%s2009_s0 + $0x110] sm:$0x1f]  ;;  %v1014_v18 = vld [vmem:[%s2009_s0 + $0x120] sm:$0x1f]  ;;  %v1022_v47 = vld [vmem:[%s2009_s0 + $0x145] sm:$0x3f] }
  0x5b   :  { %v541_v35 = vmax.f32 %v537_v7, %v540_v4  ;;  %v543_v39 = vmax.f32 %v539_v50, %v542_v5  ;;  %v639_v43 = vmax.f32 %v632_v24, %v634_v41  ;;  %v663_v46 = vmax.f32 %v528_v57, %v536_v0 }
  0x5c   :  { %v579_v15 = vsel %vm40_vm0, %v578_v25, -inf  ;;  %v609_v6 = vmax.f32 %v607_v28, %v608_v14  ;;  %v640_v61 = vmax.f32 %v636_v42, %v638_v52  ;;  %v665_v17 = vmax.f32 %v530_v51, %v538_v3  ;;  %v1019_v3 = vld [vmem:[%s2009_s0 + $0x115] sm:$0x3f]  ;;  %v1024_v42 = vld [vmem:[%s2009_s0 + $0x10b] sm:$0x1f] }
  0x5d   :  { %v544_v20 = vmax.f32 %v541_v35, %v543_v39  ;;  %v580_v54 = vrot.slane %v579_v15, 4  ;;  %v667_v12 = vmax.f32 %v532_v58, %v540_v4  ;;  %v669_v1 = vmax.f32 %v534_v63, %v542_v5 }
  0x5e   :  { %v610_v21 = vsel %vm40_vm0, %v609_v6, -inf  ;;  %v641_v32 = vmax.f32 %v639_v43, %v640_v61  ;;  %v670_v19 = vmax.f32 %v663_v46, %v665_v17  ;;  %v686_v55 = vsel %vm244_vm1, %v1012_v53, -inf  ;;  %v1025_v46 = vld [vmem:[%s2009_s0 + $0x11b] sm:$0x1f]  ;;  %v1026_v53 = vld [vmem:[%s2009_s0 + $0x12b] sm:$0x1f] }
  0x5f   :  { %v546_v8 = vsel %vm40_vm0, %v544_v20, -inf  ;;  %v581_v27 = vmax.f32 %v579_v15, %v580_v54  ;;  %v611_v13 = vrot.slane %v610_v21, 4  ;;  %v671_v40 = vmax.f32 %v667_v12, %v669_v1  ;;  %v1027_v20 = vld [vmem:[%s2009_s0 + $0x13b] sm:$0x1f]  ;;  %v1028_v54 = vld [vmem:[%s2009_s0 + $0x14b] sm:$0x1f] }
  0x60   :  { %v547_v38 = vmax.f32 %v545_v11, %v546_v8  ;;  %v642_v44 = vsel %vm40_vm0, %v641_v32, -inf  ;;  %v687_v45 = vsel %vm244_vm1, %v1013_v2, -inf  ;;  %v688_v57 = vsel %vm244_vm1, %v1014_v18, -inf  ;;  %v1031_v8 = vld [vmem:[%s2009_s0 + $0x160] sm:$0x1f] }
  0x61   :  { %v582_v51 = vrot.slane %v581_v27, 2  ;;  %v612_v58 = vmax.f32 %v610_v21, %v611_v13  ;;  %v643_v59 = vrot.slane %v642_v44, 4  ;;  %v672_v60 = vmax.f32 %v670_v19, %v671_v40  ;;  %v1030_v21 = vld [vmem:[%s2009_s0 + $0x150] sm:$0x1f] }
  0x62   :  { %v548_v62 = vrot.slane %v547_v38, 4  ;;  %v689_v63 = vsel %vm244_vm1, %v1015_v33, -inf  ;;  %v690_v0 = vsel %vm244_vm1, %v1016_v56, -inf  ;;  %v708_v4 = vsel %vm267_vm2, %v1018_v26, -inf }
  0x63   :  { %v583_v5 = vmax.f32 %v581_v27, %v582_v51  ;;  %v613_v9 = vrot.slane %v612_v58, 2  ;;  %v644_v10 = vmax.f32 %v642_v44, %v643_v59  ;;  %v673_v11 = vsel %vm40_vm0, %v672_v60, -inf  ;;  %v1032_v27 = vld [vmem:[%s2009_s0 + $0x170] sm:$0x1f]  ;;  %v1035_v59 = vld [vmem:[%s2009_s0 + $0x1a0] sm:$0x1f] }
  0x64   :  { %v549_v22 = vmax.f32 %v547_v38, %v548_v62  ;;  %v674_v23 = vrot.slane %v673_v11, 4  ;;  %v691_v29 = vmax.f32 %v686_v55, %v690_v0  ;;  %v693_v30 = vmax.f32 %v688_v57, %v689_v63  ;;  %v1033_v38 = vld [vmem:[%s2009_s0 + $0x180] sm:$0x1f] }
  0x65   :  { %v584_v34 = vrot.slane %v583_v5, 1  ;;  %v614_v36 = vmax.f32 %v612_v58, %v613_v9  ;;  %v645_v37 = vrot.slane %v644_v10, 2  ;;  %v709_v48 = vsel %vm267_vm2, %v1019_v3, -inf  ;;  %v1034_v58 = vld [vmem:[%s2009_s0 + $0x190] sm:$0x1f] }
  0x66   :  { %v550_v49 = vrot.slane %v549_v22, 2  ;;  %v675_v24 = vmax.f32 %v673_v11, %v674_v23  ;;  %v692_v7 = vmax.f32 %v691_v29, %v687_v45  ;;  %v710_v50 = vsel %vm267_vm2, %v1020_v16, -inf  ;;  %v1037_v3 = vld [vmem:[%s2009_s0 + $0x155] sm:$0x3f] }
  0x67   :  { %v585_v28 = vmax.f32 %v583_v5, %v584_v34  ;;  %v615_v41 = vrot.slane %v614_v36, 1  ;;  %v646_v25 = vmax.f32 %v644_v10, %v645_v37  ;;  %v711_v14 = vsel %vm267_vm2, %v1021_v31, -inf  ;;  %v1039_v16 = vld [vmem:[%s2009_s0 + $0x175] sm:$0x3f]  ;;  %v1040_v31 = vld [vmem:[%s2009_s0 + $0x185] sm:$0x3f] }
  0x68   :  { %v551_v52 = vmax.f32 %v549_v22, %v550_v49  ;;  %v676_v35 = vrot.slane %v675_v24, 2  ;;  %v694_v39 = vmax.f32 %v692_v7, %v693_v30  ;;  %v712_v43 = vsel %vm267_vm2, %v1022_v47, -inf  ;;  %v1042_v49 = vld [vmem:[%s2009_s0 + $0x1a5] sm:$0x3f] }
  0x69   :  { %984 = vst.msk [vmem:[%s2010_s1 + $0x11] sm:$0x1] %vm112_vm3, %v585_v28  ;;  %v616_v15 = vmax.f32 %v614_v36, %v615_v41  ;;  %v647_v6 = vrot.slane %v646_v25, 1  ;;  %v713_v61 = vmax.f32 %v708_v4, %v712_v43  ;;  %v715_v17 = vmax.f32 %v710_v50, %v711_v14  ;;  %v1038_v4 = vld [vmem:[%s2009_s0 + $0x165] sm:$0x3f] }
  0x6a   :  { %v552_v12 = vrot.slane %v551_v52, 1  ;;  %v677_v1 = vmax.f32 %v675_v24, %v676_v35  ;;  %v695_v2 = vsel %vm244_vm1, %v694_v39, -inf  ;;  %v730_v18 = vsel %vm244_vm1, %v1024_v42, -inf  ;;  %v1044_v41 = vld [vmem:[%s2009_s0 + $0x15b] sm:$0x1f] }
  0x6b   :  { %993 = vst.msk [vmem:[%s2010_s1 + $0x12] sm:$0x1] %vm112_vm3, %v616_v15  ;;  %v648_v32 = vmax.f32 %v646_v25, %v647_v6  ;;  %v696_v19 = vrot.slane %v695_v2, 4  ;;  %v714_v33 = vmax.f32 %v713_v61, %v709_v48  ;;  %v731_v55 = vsel %vm244_vm1, %v1025_v46, -inf  ;;  %v1041_v48 = vld [vmem:[%s2009_s0 + $0x195] sm:$0x3f] }
  0x6c   :  { %v553_v13 = vmax.f32 %v551_v52, %v552_v12  ;;  %v678_v40 = vrot.slane %v677_v1, 1  ;;  %v732_v56 = vsel %vm244_vm1, %v1026_v53, -inf  ;;  %v733_v26 = vsel %vm244_vm1, %v1027_v20, -inf  ;;  %v1045_v35 = vld [vmem:[%s2009_s0 + $0x16b] sm:$0x1f] }
  0x6d   :  { %1002 = vst.msk [vmem:[%s2010_s1 + $0x13] sm:$0x1] %vm112_vm3, %v648_v32  ;;  %v697_v44 = vmax.f32 %v695_v2, %v696_v19  ;;  %v716_v45 = vmax.f32 %v714_v33, %v715_v17  ;;  %v734_v57 = vsel %vm244_vm1, %v1028_v54, -inf  ;;  %v737_v51 = vmax.f32 %v732_v56, %v733_v26  ;;  %v1046_v15 = vld [vmem:[%s2009_s0 + $0x17b] sm:$0x1f] }
  0x6e   :  { %975 = vst.msk [vmem:[%s2010_s1 + $0x10] sm:$0x1] %vm112_vm3, %v553_v13  ;;  %v679_v60 = vmax.f32 %v677_v1, %v678_v40  ;;  %v735_v62 = vmax.f32 %v730_v18, %v734_v57  ;;  %v754_v63 = vsel %vm244_vm1, %v1030_v21, -inf  ;;  %v755_v0 = vsel %vm244_vm1, %v1031_v8, -inf  ;;  %v1047_v54 = vld [vmem:[%s2009_s0 + $0x18b] sm:$0x1f] }
  0x6f   :  { %v698_v5 = vrot.slane %v697_v44, 2  ;;  %v717_v9 = vsel %vm267_vm2, %v716_v45, -inf  ;;  %v756_v10 = vsel %vm244_vm1, %v1032_v27, -inf  ;;  %v757_v11 = vsel %vm244_vm1, %v1033_v38, -inf  ;;  %v1048_v12 = vld [vmem:[%s2009_s0 + $0x19b] sm:$0x1f] }
  0x70   :  { %1011 = vst.msk [vmem:[%s2010_s1 + $0x14] sm:$0x1] %vm112_vm3, %v679_v60  ;;  %v718_v22 = vrot.slane %v717_v9, 4  ;;  %v736_v23 = vmax.f32 %v735_v62, %v731_v55  ;;  %v758_v29 = vsel %vm244_vm1, %v1034_v58, -inf  ;;  %v760_v30 = vsel %vm244_vm1, %v1035_v59, -inf }
  0x71   :  { %v699_v34 = vmax.f32 %v697_v44, %v698_v5  ;;  %v759_v36 = vmax.f32 %v754_v63, %v758_v29  ;;  %v761_v37 = vmax.f32 %v755_v0, %v760_v30  ;;  %v763_v47 = vmax.f32 %v756_v10, %v757_v11  ;;  %v1049_v21 = vld [vmem:[%s2009_s0 + $0x1ab] sm:$0x1f]  ;;  %v1051_v19 = vld [vmem:[%s2009_s0 + $0x1b0] sm:$0x1f]  ;;  %v1052_v13 = vld [vmem:[%s2009_s0 + $0x1c0] sm:$0x1f] }
  0x72   :  { %v719_v24 = vmax.f32 %v717_v9, %v718_v22  ;;  %v738_v7 = vmax.f32 %v736_v23, %v737_v51  ;;  %v779_v50 = vsel %vm267_vm2, %v1037_v3, -inf  ;;  %v780_v28 = vsel %vm267_vm2, %v1038_v4, -inf  ;;  %v1053_v44 = vld [vmem:[%s2009_s0 + $0x1d0] sm:$0x1f]  ;;  %v1054_v59 = vld [vmem:[%s2009_s0 + $0x1e0] sm:$0x1f] }
  0x73   :  { %v700_v25 = vrot.slane %v699_v34, 1  ;;  %v762_v14 = vmax.f32 %v759_v36, %v761_v37  ;;  %v781_v42 = vsel %vm267_vm2, %v1039_v16, -inf  ;;  %v782_v52 = vsel %vm267_vm2, %v1040_v31, -inf  ;;  %v1055_v3 = vld [vmem:[%s2009_s0 + $0x1f0] sm:$0x1f] }
  0x74   :  { %v720_v39 = vrot.slane %v719_v24, 2  ;;  %v739_v43 = vsel %vm244_vm1, %v738_v7, -inf  ;;  %v783_v46 = vsel %vm267_vm2, %v1041_v48, -inf  ;;  %v785_v53 = vsel %vm267_vm2, %v1042_v49, -inf  ;;  %v1057_v11 = vld [vmem:[%s2009_s0 + $0x1b5] sm:$0x3f] }
  0x75   :  { %v701_v6 = vmax.f32 %v699_v34, %v700_v25  ;;  %v740_v61 = vrot.slane %v739_v43, 4  ;;  %v764_v17 = vmax.f32 %v762_v14, %v763_v47  ;;  %v784_v20 = vmax.f32 %v779_v50, %v783_v46  ;;  %v1058_v16 = vld [vmem:[%s2009_s0 + $0x1c5] sm:$0x3f]  ;;  %v1059_v31 = vld [vmem:[%s2009_s0 + $0x1d5] sm:$0x3f] }
  0x76   :  { %v721_v1 = vmax.f32 %v719_v24, %v720_v39  ;;  %v786_v2 = vmax.f32 %v780_v28, %v785_v53  ;;  %v788_v18 = vmax.f32 %v781_v42, %v782_v52  ;;  %v804_v32 = vsel %vm244_vm1, %v1044_v41, -inf  ;;  %v1060_v48 = vld [vmem:[%s2009_s0 + $0x1e5] sm:$0x3f]  ;;  %v1061_v50 = vld [vmem:[%s2009_s0 + $0x1f5] sm:$0x3f] }
  0x77   :  { %1017 = vst.msk [vmem:[%s2010_s1 + $0x15] sm:$0x1] %vm112_vm3, %v701_v6  ;;  %v741_v33 = vmax.f32 %v739_v43, %v740_v61  ;;  %v765_v55 = vsel %vm244_vm1, %v764_v17, -inf  ;;  %v805_v8 = vsel %vm244_vm1, %v1045_v35, -inf  ;;  %v806_v27 = vsel %vm244_vm1, %v1046_v15, -inf }
  0x78   :  { %v722_v40 = vrot.slane %v721_v1, 1  ;;  %v766_v56 = vrot.slane %v765_v55, 4  ;;  %v787_v26 = vmax.f32 %v784_v20, %v786_v2  ;;  %v807_v38 = vsel %vm244_vm1, %v1047_v54, -inf  ;;  %v1063_v52 = vld [vmem:[%s2009_s0 + $0x1bb] sm:$0x1f] }
  0x79   :  { %v742_v45 = vrot.slane %v741_v33, 2  ;;  %v808_v57 = vsel %vm244_vm1, %v1048_v12, -inf  ;;  %v810_v51 = vsel %vm244_vm1, %v1049_v21, -inf  ;;  %v813_v58 = vmax.f32 %v806_v27, %v807_v38  ;;  %v1065_v53 = vld [vmem:[%s2009_s0 + $0x1db] sm:$0x1f] }
  0x7a   :  { %v723_v60 = vmax.f32 %v721_v1, %v722_v40  ;;  %v767_v62 = vmax.f32 %v765_v55, %v766_v56  ;;  %v789_v63 = vmax.f32 %v787_v26, %v788_v18  ;;  %v809_v0 = vmax.f32 %v804_v32, %v808_v57  ;;  %v1066_v20 = vld [vmem:[%s2009_s0 + $0x1eb] sm:$0x1f]  ;;  %v1067_v21 = vld [vmem:[%s2009_s0 + $0x1fb] sm:$0x1f] }
  0x7b   :  { %v743_v4 = vmax.f32 %v741_v33, %v742_v45  ;;  %v811_v5 = vmax.f32 %v805_v8, %v810_v51  ;;  %v829_v9 = vsel %vm244_vm1, %v1051_v19, -inf  ;;  %v830_v10 = vsel %vm244_vm1, %v1052_v13, -inf  ;;  %v1064_v18 = vld [vmem:[%s2009_s0 + $0x1cb] sm:$0x1f] }
  0x7c   :  { %1023 = vst.msk [vmem:[%s2010_s1 + $0x16] sm:$0x1] %vm112_vm3, %v723_v60  ;;  %v768_v22 = vrot.slane %v767_v62, 2  ;;  %v790_v23 = vsel %vm267_vm2, %v789_v63, -inf  ;;  %v831_v29 = vsel %vm244_vm1, %v1053_v44, -inf  ;;  %v832_v30 = vsel %vm244_vm1, %v1054_v59, -inf }
  0x7d   :  { %v744_v34 = vrot.slane %v743_v4, 1  ;;  %v791_v36 = vrot.slane %v790_v23, 4  ;;  %v812_v37 = vmax.f32 %v809_v0, %v811_v5  ;;  %v833_v47 = vsel %vm244_vm1, %v1055_v3, -inf }
  0x7e   :  { %v769_v49 = vmax.f32 %v767_v62, %v768_v22  ;;  %v834_v24 = vmax.f32 %v829_v9, %v833_v47  ;;  %v836_v7 = vmax.f32 %v831_v29, %v832_v30  ;;  %v851_v28 = vsel %vm267_vm2, %v1057_v11, -inf }
  0x7f   :  { %v745_v41 = vmax.f32 %v743_v4, %v744_v34  ;;  %v792_v25 = vmax.f32 %v790_v23, %v791_v36  ;;  %v814_v14 = vmax.f32 %v812_v37, %v813_v58  ;;  %v852_v42 = vsel %vm267_vm2, %v1058_v16, -inf }
  0x80   :  { %v770_v35 = vrot.slane %v769_v49, 1  ;;  %v835_v39 = vmax.f32 %v834_v24, %v830_v10  ;;  %v853_v43 = vsel %vm267_vm2, %v1059_v31, -inf  ;;  %v854_v46 = vsel %vm267_vm2, %v1060_v48, -inf }
  0x81   :  { %1029 = vst.msk [vmem:[%s2010_s1 + $0x17] sm:$0x1] %vm112_vm3, %v745_v41  ;;  %v793_v15 = vrot.slane %v792_v25, 2  ;;  %v815_v6 = vsel %vm244_vm1, %v814_v14, -inf  ;;  %v855_v61 = vsel %vm267_vm2, %v1061_v50, -inf  ;;  %v858_v17 = vmax.f32 %v853_v43, %v854_v46 }
  0x82   :  { %v771_v54 = vmax.f32 %v769_v49, %v770_v35  ;;  %v816_v12 = vrot.slane %v815_v6, 4  ;;  %v837_v1 = vmax.f32 %v835_v39, %v836_v7  ;;  %v856_v2 = vmax.f32 %v851_v28, %v855_v61 }
  0x83   :  { %v794_v32 = vmax.f32 %v792_v25, %v793_v15  ;;  %v873_v19 = vsel %vm244_vm1, %v1063_v52, -inf  ;;  %v875_v33 = vsel %vm244_vm1, %v1065_v53, -inf  ;;  %v876_v13 = vsel %vm244_vm1, %v1066_v20, -inf }
  0x84   :  { %1036 = vst.msk [vmem:[%s2010_s1 + $0x18] sm:$0x1] %vm112_vm3, %v771_v54  ;;  %v817_v55 = vmax.f32 %v815_v6, %v816_v12  ;;  %v838_v8 = vsel %vm244_vm1, %v837_v1, -inf  ;;  %v857_v27 = vmax.f32 %v856_v2, %v852_v42  ;;  %v874_v26 = vsel %vm244_vm1, %v1064_v18, -inf }
  0x85   :  { %v795_v40 = vrot.slane %v794_v32, 1  ;;  %v839_v56 = vrot.slane %v838_v8, 4  ;;  %v877_v38 = vsel %vm244_vm1, %v1067_v21, -inf  ;;  %v880_v51 = vmax.f32 %v875_v33, %v876_v13 }
  0x86   :  { %v818_v44 = vrot.slane %v817_v55, 2  ;;  %v859_v45 = vmax.f32 %v857_v27, %v858_v17  ;;  %v878_v57 = vmax.f32 %v873_v19, %v877_v38 }
  0x87   :  { %v796_v58 = vmax.f32 %v794_v32, %v795_v40  ;;  %v840_v59 = vmax.f32 %v838_v8, %v839_v56 }
  0x88   :  { %v819_v60 = vmax.f32 %v817_v55, %v818_v44  ;;  %v860_v62 = vsel %vm267_vm2, %v859_v45, -inf  ;;  %v879_v63 = vmax.f32 %v878_v57, %v874_v26 }
  0x89   :  { %1043 = vst.msk [vmem:[%s2010_s1 + $0x19] sm:$0x1] %vm112_vm3, %v796_v58  ;;  %v841_v0 = vrot.slane %v840_v59, 2  ;;  %v861_v3 = vrot.slane %v860_v62, 4 }
  0x8a   :  { %v820_v4 = vrot.slane %v819_v60, 1  ;;  %v881_v5 = vmax.f32 %v879_v63, %v880_v51 }
  0x8b   :  { %v842_v9 = vmax.f32 %v840_v59, %v841_v0  ;;  %v862_v10 = vmax.f32 %v860_v62, %v861_v3 }
  0x8c   :  { %v821_v11 = vmax.f32 %v819_v60, %v820_v4  ;;  %v882_v16 = vsel %vm244_vm1, %v881_v5, -inf }
  0x8d   :  { %v843_v22 = vrot.slane %v842_v9, 1  ;;  %v863_v23 = vrot.slane %v862_v10, 2  ;;  %v883_v29 = vrot.slane %v882_v16, 4 }
  0x8e   :  { %1050 = vst.msk [vmem:[%s2010_s1 + $0x1a] sm:$0x1] %vm112_vm3, %v821_v11 }
  0x8f   :  { %v844_v30 = vmax.f32 %v842_v9, %v843_v22  ;;  %v864_v31 = vmax.f32 %v862_v10, %v863_v23  ;;  %v884_v34 = vmax.f32 %v882_v16, %v883_v29 }
  0x91   :  { %1056 = vst.msk [vmem:[%s2010_s1 + $0x1b] sm:$0x1] %vm112_vm3, %v844_v30  ;;  %v865_v36 = vrot.slane %v864_v31, 1  ;;  %v885_v37 = vrot.slane %v884_v34, 2 }
  0x93   :  { %v866_v47 = vmax.f32 %v864_v31, %v865_v36  ;;  %v886_v48 = vmax.f32 %v884_v34, %v885_v37 }
  0x95   :  { %1062 = vst.msk [vmem:[%s2010_s1 + $0x1c] sm:$0x1] %vm112_vm3, %v866_v47  ;;  %v887_v49 = vrot.slane %v886_v48, 1 }
  0x97   :  { %v888_v24 = vmax.f32 %v886_v48, %v887_v49 }
  0x99   :  { %1068 = vst.msk [vmem:[%s2010_s1 + $0x1d] sm:$0x1] %vm112_vm3, %v888_v24 }

</bundles_post_ra>
